<compile_context>
chip_gen: v6e
topology: v6e:2x2x1
jax: 0.10.0
libtpu: 0.0.40
codegen_flags: <defaults>
</compile_context>

<pallas_src>
import functools

import jax
import jax.numpy as jnp
from jax.experimental import pallas as pl
from jax.experimental.pallas import tpu as pltpu


def _round_up(n, m):
    return (n + m - 1) // m * m


def _pick_tile_p(total_p, max_tile_p=512):
    """Pillar-tile size: divides total_p, is a multiple of 8 sublanes (or the
    full extent), stays small enough for VMEM, and prefers >= 2 grid steps so
    the parallel axis can shard across v7x's two TensorCores."""
    candidates = [
        t for t in range(1, min(total_p, max_tile_p) + 1)
        if total_p % t == 0 and (t % 8 == 0 or t == total_p)
    ]
    if not candidates:
        return total_p
    multi = [t for t in candidates if total_p // t >= 2]
    return max(multi) if multi else max(candidates)


def _pillar_encoder_kernel(x_ref, w1_ref, b1_ref, w2_ref, b2_ref, o_ref):
    """One pillar tile.

    x_ref:  [TILE_P * N, F]   bf16   (points as rows)
    w1_ref: [F, H1p]          bf16   (BN1 scale already folded in)
    b1_ref: [1, H1p]          f32    (BN1 shift)
    w2_ref: [H1p, Cp]         bf16   (BN2 scale already folded in)
    b2_ref: [1, Cp]           f32    (BN2 shift)
    o_ref:  [TILE_P, Cp]      f32    (per-pillar max over the N points)
    """
    rows, _ = x_ref.shape
    tile_p, cp = o_ref.shape
    n = rows // tile_p

    # conv1x1 + folded BN1 + ReLU   (MXU bf16, f32 accumulate; epilogue f32)
    h1 = jnp.dot(x_ref[...], w1_ref[...], preferred_element_type=jnp.float32)
    h1 = jnp.maximum(h1 + b1_ref[...], 0.0)

    # conv1x1 + folded BN2 + ReLU
    h2 = jnp.dot(h1.astype(jnp.bfloat16), w2_ref[...],
                 preferred_element_type=jnp.float32)
    h2 = jnp.maximum(h2 + b2_ref[...], 0.0)

    # MaxPool2d((1, N)): sublane reduce over the N points of each pillar.
    o_ref[...] = jnp.max(h2.reshape(tile_p, n, cp), axis=1)


def pillar_encoder_pallas(pillars, folded_params):
    """pillars [B, P, N, F] f32 -> per-pillar features [B*P, Cp] f32."""
    w1, b1, w2, b2 = folded_params
    B, P, N, F = pillars.shape
    H1p = w1.shape[1]
    Cp = w2.shape[1]

    total_p = B * P
    tile_p = _pick_tile_p(total_p)
    grid = (total_p // tile_p,)

    # HBM-level reshape (free metadata) + bf16 cast: halves DMA bytes and
    # gives the kernel a clean [rows, F] tile, no in-kernel relayout.
    x = pillars.reshape(total_p * N, F).astype(jnp.bfloat16)

    return pl.pallas_call(
        _pillar_encoder_kernel,
        out_shape=jax.ShapeDtypeStruct((total_p, Cp), jnp.float32),
        grid_spec=pltpu.PrefetchScalarGridSpec(
            num_scalar_prefetch=0,
            grid=grid,
            in_specs=[
                pl.BlockSpec((tile_p * N, F), lambda i: (i, 0)),
                pl.BlockSpec((F, H1p), lambda i: (0, 0)),
                pl.BlockSpec((1, H1p), lambda i: (0, 0)),
                pl.BlockSpec((H1p, Cp), lambda i: (0, 0)),
                pl.BlockSpec((1, Cp), lambda i: (0, 0)),
            ],
            out_specs=pl.BlockSpec((tile_p, Cp), lambda i: (i, 0)),
        ),
        compiler_params=pltpu.CompilerParams(
            dimension_semantics=("parallel",)),
    )(x, w1, b1, w2, b2)


def fold_and_pad_params(params, lane=128):
    """Fold BN scale into the conv weights, zero-pad channel dims to lane
    multiples (lane-dense vregs / unmasked stores), cast weights to bf16."""
    w1, s1, b1, w2, s2, b2 = params
    F, H1 = w1.shape
    _, C = w2.shape
    H1p, Cp = _round_up(H1, lane), _round_up(C, lane)

    w1f = w1 * s1                               # BN1 scale folded into conv1
    w2f = w2 * s2                               # BN2 scale folded into conv2

    w1p = jnp.zeros((F, H1p), jnp.float32).at[:, :H1].set(w1f)
    b1p = jnp.zeros((1, H1p), jnp.float32).at[:, :H1].set(b1)
    w2p = jnp.zeros((H1p, Cp), jnp.float32).at[:H1, :C].set(w2f)
    b2p = jnp.zeros((1, Cp), jnp.float32).at[:, :C].set(b2)
    # Padded H1 columns stay exactly 0 through ReLU and feed zero rows of w2p,
    # padded C columns stay exactly 0 and are sliced off in the wrapper.
    return (w1p.astype(jnp.bfloat16), b1p, w2p.astype(jnp.bfloat16), b2p)


def pointpillars_forward(pillars, pillar_indices, params, Xn, Yn):
    """Full PointPillars.forward: Pallas encoder + canvas scatter (JAX glue).

    pillars:        [B, P, N, F] float32
    pillar_indices: [B, P, 3]    int32  (col 1, col 2 as in the torch module)
    returns:        [B, C, Xn, Yn] float32
    """
    B, P, N, F = pillars.shape
    C = params[3].shape[1]                      # unpadded num_channels

    folded = fold_and_pad_params(params)
    feats = pillar_encoder_pallas(pillars, folded)        # [B*P, Cp]
    feats = feats[:, :C].reshape(B, P, C)                 # drop lane padding

    # Exactly the torch module's index math (clip upper bound hardcoded to 143
    # in the original; it is a no-op for the small test grid used here).
    col = jnp.clip(pillar_indices[:, :, 2], 0, 143)
    flat = pillar_indices[:, :, 1] * Xn + col             # [B, P]

    # canvas[:, flat] = out[i]  (dense per-batch scatter, last-write on dups).
    # TODO(synk): for production pillar counts, fuse this scatter into the
    # Pallas kernel (scalar-prefetched flat indices + HBM canvas writeback)
    # to avoid the extra HBM round trip of the encoder output.
    def scatter_one(flat_b, feat_b):
        return jnp.zeros((Xn * Yn, C), jnp.float32).at[flat_b].set(feat_b)

    canvas = jax.vmap(scatter_one)(flat, feats)           # [B, Xn*Yn, C]
    canvas = jnp.transpose(canvas, (0, 2, 1))             # [B, C, Xn*Yn]
    return canvas.reshape(B, C, Xn, Yn)


def _ref_forward(pillars, pillar_indices, params, Xn, Yn):
    """Pure-jnp reference of the same math (bf16 MXU inputs, f32 accumulate)."""
    B, P, N, F = pillars.shape
    w1, s1, b1, w2, s2, b2 = params
    C = w2.shape[1]
    w1f = (w1 * s1).astype(jnp.bfloat16)
    w2f = (w2 * s2).astype(jnp.bfloat16)
    x = pillars.reshape(B, P * N, F).astype(jnp.bfloat16)
    h1 = jnp.maximum(
        jnp.dot(x, w1f, preferred_element_type=jnp.float32) + b1, 0.0)
    h2 = jnp.maximum(
        jnp.dot(h1.astype(jnp.bfloat16), w2f,
                preferred_element_type=jnp.float32) + b2, 0.0)
    out = h2.reshape(B, P, N, C).max(axis=2)
    col = jnp.clip(pillar_indices[:, :, 2], 0, 143)
    flat = pillar_indices[:, :, 1] * Xn + col
    canvas = jax.vmap(
        lambda f_, o_: jnp.zeros((Xn * Yn, C), jnp.float32).at[f_].set(o_))(
            flat, out)
    return jnp.transpose(canvas, (0, 2, 1)).reshape(B, C, Xn, Yn)


def make_params(key, num_features, num_channels):
    """Deterministic synthetic weights; BatchNorm as inference (scale, shift)."""
    F, C = num_features, num_channels
    H1 = 2 * C
    eps = 1e-5
    ks = jax.random.split(key, 10)

    # Conv2d weights are [out, in, 1, 1] in torch; stored here in [in, out]
    # matmul form (mathematically identical for kernel_size=1).
    w1 = 0.1 * jax.random.normal(ks[0], (F, H1), jnp.float32)
    w2 = 0.1 * jax.random.normal(ks[1], (H1, C), jnp.float32)

    def bn_affine(kg, kb, km, kv, n):
        gamma = jax.random.uniform(kg, (1, n), jnp.float32, 0.5, 1.5)
        beta = 0.1 * jax.random.normal(kb, (1, n), jnp.float32)
        mean = 0.1 * jax.random.normal(km, (1, n), jnp.float32)
        var = jax.random.uniform(kv, (1, n), jnp.float32, 0.5, 1.5)
        scale = gamma / jnp.sqrt(var + eps)
        shift = beta - mean * scale
        return scale, shift

    s1, b1 = bn_affine(ks[2], ks[3], ks[4], ks[5], H1)
    s2, b2 = bn_affine(ks[6], ks[7], ks[8], ks[9], C)
    return (w1, s1, b1, w2, s2, b2)


if __name__ == "__main__":
    # Small shapes consistent with the module's forward:
    #   pillars [B, P, max_points_per_pillar, num_features]
    #   pillar_indices [B, P, 3]
    B = 2
    P = 64                    # number of pillars
    N = 8                     # max_points_per_pillar
    F = 8                     # num_features
    C = 16                    # num_channels
    Xn = 16
    Yn = 16

    key = jax.random.PRNGKey(0)
    k_pil, k_idx, k_par = jax.random.split(key, 3)

    pillars = jax.random.normal(k_pil, (B, P, N, F), jnp.float32)

    # Unique pillar locations per batch (col0 = batch id, col1, col2) so the
    # scatter has no duplicate-index ambiguity and stays in range.
    def make_idx(k, b):
        flat = jax.random.permutation(k, Xn * Yn)[:P]
        return jnp.stack(
            [jnp.full((P,), b, jnp.int32),
             (flat // Xn).astype(jnp.int32),
             (flat % Xn).astype(jnp.int32)], axis=-1)

    idx_keys = jax.random.split(k_idx, B)
    pillar_indices = jnp.stack([make_idx(idx_keys[b], b) for b in range(B)], 0)

    params = make_params(k_par, F, C)

    fwd = jax.jit(functools.partial(pointpillars_forward, Xn=Xn, Yn=Yn))
    out = fwd(pillars, pillar_indices, params)
    jax.block_until_ready(out)

    ref = _ref_forward(pillars, pillar_indices, params, Xn, Yn)
    assert out.shape == (B, C, Xn, Yn), out.shape
    # Both kernel and reference use bf16 MXU inputs with f32 accumulation, so
    # only accumulation-order noise remains.
    assert jnp.allclose(out, ref, atol=2e-3, rtol=2e-3), float(
        jnp.max(jnp.abs(out - ref)))

    print("KERNEL_OK")
</pallas_src>

<mosaic_0001>
module attributes {stable_mosaic.version = 11 : i64} {
  func.func @_pillar_encoder_kernel(%arg0: i32, %arg1: memref<512x8xbf16, #tpu.memory_space<vmem>>, %arg2: memref<8x128xbf16, #tpu.memory_space<vmem>>, %arg3: memref<1x128xf32, #tpu.memory_space<vmem>>, %arg4: memref<128x128xbf16, #tpu.memory_space<vmem>>, %arg5: memref<1x128xf32, #tpu.memory_space<vmem>>, %arg6: memref<64x128xf32, #tpu.memory_space<vmem>>) attributes {dimension_semantics = [#tpu.dimension_semantics<parallel>], iteration_bounds = array<i64: 2>, scalar_prefetch = 0 : i64, scratch_operands = 0 : i64, tpu.core_type = #tpu.core_type<tc>, window_params = [{transform_indices = @transform_0, window_bounds = array<i64: 512, 8>}, {pipeline_mode = #tpu.pipeline_mode<synchronous>, transform_indices = @transform_1, window_bounds = array<i64: 8, 128>}, {pipeline_mode = #tpu.pipeline_mode<synchronous>, transform_indices = @transform_2, window_bounds = array<i64: 1, 128>}, {pipeline_mode = #tpu.pipeline_mode<synchronous>, transform_indices = @transform_3, window_bounds = array<i64: 128, 128>}, {pipeline_mode = #tpu.pipeline_mode<synchronous>, transform_indices = @transform_4, window_bounds = array<i64: 1, 128>}, {transform_indices = @transform_5, window_bounds = array<i64: 64, 128>}]} {
    %c0 = arith.constant 0 : index
    %c0_0 = arith.constant 0 : index
    %0 = vector.load %arg1[%c0, %c0_0] : memref<512x8xbf16, #tpu.memory_space<vmem>>, vector<512x8xbf16>
    %c0_1 = arith.constant 0 : index
    %c0_2 = arith.constant 0 : index
    %1 = vector.load %arg2[%c0_1, %c0_2] : memref<8x128xbf16, #tpu.memory_space<vmem>>, vector<8x128xbf16>
    %cst = arith.constant dense<0.000000e+00> : vector<512x128xf32>
    %2 = tpu.matmul %0, %1, %cst {dimension_numbers = #tpu.dot_dimension_numbers<[1], [0], [0], [1], [0, 0, 1, 1], [], []>} : vector<512x8xbf16>, vector<8x128xbf16>, vector<512x128xf32> -> vector<512x128xf32>
    %c0_3 = arith.constant 0 : index
    %c0_4 = arith.constant 0 : index
    %3 = vector.load %arg3[%c0_3, %c0_4] : memref<1x128xf32, #tpu.memory_space<vmem>>, vector<1x128xf32>
    %4 = vector.broadcast %3 : vector<1x128xf32> to vector<512x128xf32>
    %5 = arith.addf %2, %4 : vector<512x128xf32>
    %cst_5 = arith.constant 0.000000e+00 : f32
    %6 = vector.broadcast %cst_5 : f32 to vector<512x128xf32>
    %7 = arith.maximumf %5, %6 : vector<512x128xf32>
    %8 = arith.truncf %7 : vector<512x128xf32> to vector<512x128xbf16>
    %c0_6 = arith.constant 0 : index
    %c0_7 = arith.constant 0 : index
    %9 = vector.load %arg4[%c0_6, %c0_7] : memref<128x128xbf16, #tpu.memory_space<vmem>>, vector<128x128xbf16>
    %cst_8 = arith.constant dense<0.000000e+00> : vector<512x128xf32>
    %10 = tpu.matmul %8, %9, %cst_8 {dimension_numbers = #tpu.dot_dimension_numbers<[1], [0], [0], [1], [0, 0, 1, 1], [], []>} : vector<512x128xbf16>, vector<128x128xbf16>, vector<512x128xf32> -> vector<512x128xf32>
    %c0_9 = arith.constant 0 : index
    %c0_10 = arith.constant 0 : index
    %11 = vector.load %arg5[%c0_9, %c0_10] : memref<1x128xf32, #tpu.memory_space<vmem>>, vector<1x128xf32>
    %12 = vector.broadcast %11 : vector<1x128xf32> to vector<512x128xf32>
    %13 = arith.addf %10, %12 : vector<512x128xf32>
    %cst_11 = arith.constant 0.000000e+00 : f32
    %14 = vector.broadcast %cst_11 : f32 to vector<512x128xf32>
    %15 = arith.maximumf %13, %14 : vector<512x128xf32>
    %16 = vector.shape_cast %15 : vector<512x128xf32> to vector<64x8x128xf32>
    %cst_12 = arith.constant dense<0xFF800000> : vector<64x128xf32>
    %17 = vector.multi_reduction <maximumf>, %16, %cst_12 [1] : vector<64x8x128xf32> to vector<64x128xf32>
    %c0_13 = arith.constant 0 : index
    %c0_14 = arith.constant 0 : index
    %18 = vector.load %arg6[%c0_13, %c0_14] : memref<64x128xf32, #tpu.memory_space<vmem>>, vector<64x128xf32>
    tpu.vector_store %arg6[%c0_13, %c0_14], %17 {strides = array<i32>} : memref<64x128xf32, #tpu.memory_space<vmem>>, vector<64x128xf32>,
    return
  }
  func.func @transform_0(%arg0: i32) -> (i32, i32) {
    %c0_i32 = arith.constant 0 : i32
    %c0_i32_0 = arith.constant 0 : i32
    return %arg0, %c0_i32 : i32, i32
  }
  func.func @transform_1(%arg0: i32) -> (i32, i32) {
    %c0_i32 = arith.constant 0 : i32
    %c0_i32_0 = arith.constant 0 : i32
    %c0_i32_1 = arith.constant 0 : i32
    return %c0_i32, %c0_i32_0 : i32, i32
  }
  func.func @transform_2(%arg0: i32) -> (i32, i32) {
    %c0_i32 = arith.constant 0 : i32
    %c0_i32_0 = arith.constant 0 : i32
    %c0_i32_1 = arith.constant 0 : i32
    return %c0_i32, %c0_i32_0 : i32, i32
  }
  func.func @transform_3(%arg0: i32) -> (i32, i32) {
    %c0_i32 = arith.constant 0 : i32
    %c0_i32_0 = arith.constant 0 : i32
    %c0_i32_1 = arith.constant 0 : i32
    return %c0_i32, %c0_i32_0 : i32, i32
  }
  func.func @transform_4(%arg0: i32) -> (i32, i32) {
    %c0_i32 = arith.constant 0 : i32
    %c0_i32_0 = arith.constant 0 : i32
    %c0_i32_1 = arith.constant 0 : i32
    return %c0_i32, %c0_i32_0 : i32, i32
  }
  func.func @transform_5(%arg0: i32) -> (i32, i32) {
    %c0_i32 = arith.constant 0 : i32
    %c0_i32_0 = arith.constant 0 : i32
    return %arg0, %c0_i32 : i32, i32
  }
}

</mosaic_0001>

<bundles_post_ra>
// kernel: pointpillars_forward.1
= control target key start
LH: loop header
LB: loop body
LE: loop exit
PB: predicated region body
PF: predicated region fallthrough
CT: control target
= control target key end

     0   :  { %s2362_s18 = smov 0   ;;  %s2708_s0 = inlined_call_operand.vmem [shape: bf16[1024,8], index: 0, kind: input, shape index: {}]   ;;  %s2709_s1 = inlined_call_operand.vmem [shape: bf16[8,128], index: 1, kind: input, shape index: {}]   ;;  %s2710_s2 = inlined_call_operand.vmem [shape: f32[1,128], index: 2, kind: input, shape index: {}]   ;;  %s2711_s3 = inlined_call_operand.vmem [shape: bf16[128,128], index: 3, kind: input, shape index: {}]   ;;  %s2712_s4 = inlined_call_operand.vmem [shape: f32[1,128], index: 4, kind: input, shape index: {}]   ;;  %s2713_s5 = inlined_call_operand.vmem [shape: f32[128,128], index: 5, kind: output, shape index: {}]  }
   0x1 LB: > { %s1954_s19 = sadd.s32 4294967295, %s2330_s18   ;;  %p1958_p0 = scmp.ge.s32.totalorder %s2330_s18, 1  ;;  %s2330_s18 = sphi %s2362_s18, %s15_s18  }
   0x2   : > { %p188_p1 = scmp.lt.s32.totalorder %s2330_s18, 3 }
   0x4   : > { %p189_p2 = pnand %p1958_p0, %p188_p1 }
   0x5   : > { %s1959_s22 = sshll.u32 (!%p189_p2), %s1954_s19, 6  ;;  %s2553_s24 = sshll.u32 (!%p189_p2), %s1954_s19, 3 }
   0x6   : > { %192 = sbr.rel (%p189_p2) target bundleno = 571 (0x23b), region = 40  ;;  %p217_p3 = scmp.lt.s32.totalorder (!%p189_p2), %s1959_s22, 127 }
   0x7   : > { %p223_p4 = scmp.lt.s32.totalorder (!%p189_p2), %s2553_s24, 15 }
   0xb   : > { %v293_v0 = vld [vmem:[%s2709_s1] sm:$0xf]  ;;  %vm558_vm0 = vcmask 1043456   ;;  %v2315_v2 = vld [vmem:[%s2711_s3 + $0x38] sm:$0xff]   ;;  %s2715_s22 = smov (!%p217_p3, %s1959_s22), 127  ;;  %v2316_v3 = vld [vmem:[%s2711_s3 + $0x30] sm:$0xff]  }
   0xc   : > { %2274 = vmatprep.subr.msk.bf16.mxu0 %vm558_vm0, %v293_v0  ;;  %v560_v1 = vsel %vm558_vm0, %v293_v0, 0  ;;  %2258 = vmatprep.subr.bf16.mxu1 %v2315_v2  ;;  %s1960_s27 = sshll.u32 %s2715_s22, 2  ;;  %vm461_vm1 = vcmask 64512   ;;  %v2317_v4 = vld [vmem:[%s2711_s3 + $0x28] sm:$0xff]   ;;  %v2318_v8 = vld [vmem:[%s2711_s3 + $0x20] sm:$0xff]   ;;  %v2319_v11 = vld [vmem:[%s2711_s3 + $0x18] sm:$0xff]  }
   0xd   : > { %2113 = vmatpush3.bf16.msra.mxu0 %v560_v1  ;;  %2266 = vmatpush3.bf16.msra.mxu1 %v2315_v2  ;;  %s2384_s30 = scalar_lea.vmem %s2708_s0, %s1960_s27  ;;  %v2320_v26 = vld [vmem:[%s2711_s3 + $0x10] sm:$0xff]   ;;  %v2321_v28 = vld [vmem:[%s2711_s3 + $0x8] sm:$0xff]   ;;  %v2322_v30 = vld [vmem:[%s2711_s3] sm:$0xff]   ;;  %vm1819_vm2 = vcmask 1041409   ;;  %vm1821_vm3 = vcmask 1042434   ;;  %vm1823_vm4 = vcmask 1043459  }
   0xe   : > { %2178 = vmatprep.subr.bf16.mxu0 %v2315_v2  ;;  %2259 = vmatprep.subr.bf16.mxu1 %v2316_v3  ;;  %v2283_v5 = vld [vmem:[%s2384_s30] sm:$0xff]   ;;  %v2284_v6 = vld [vmem:[%s2384_s30 + $0x8] sm:$0xff]   ;;  %v2285_v7 = vld [vmem:[%s2384_s30 + $0x10] sm:$0xff]   ;;  %vm1825_vm5 = vcmask 1044484   ;;  %vm1827_vm6 = vcmask 1045509   ;;  %vm1829_vm7 = vcmask 1046534  }
   0xf   : > { %2114 = vmatprep.mubr.msk.bf16.mxu0 %vm461_vm1, %v2283_v5  ;;  %v2286_v9 = vld [vmem:[%s2384_s30 + $0x18] sm:$0xff]   ;;  %v2287_v10 = vld [vmem:[%s2384_s30 + $0x20] sm:$0xff]   ;;  %v2288_v12 = vld [vmem:[%s2384_s30 + $0x28] sm:$0xff]   ;;  %vm1831_vm8 = vcmask 1047559   ;;  %s2717_s24 = smov (!%p223_p4, %s2553_s24), 15 }
  0x10   : > { %2115 = vmatmul.mubr.msk.bf16.vlgmr.msra.gmra.mxu0 %vm461_vm1, %v2284_v6  ;;  %v2289_v13 = vld [vmem:[%s2384_s30 + $0x30] sm:$0xff]   ;;  %v2290_v14 = vld [vmem:[%s2384_s30 + $0x38] sm:$0xff]   ;;  %v2291_v15 = vld [vmem:[%s2384_s30 + $0x40] sm:$0xff]   ;;  %s1962_s19 = sshll.u32 %s2717_s24, 3 }
  0x11   : > { %2267 = vmatpush3.bf16.msra.mxu1 %v2316_v3  ;;  %2118 = vmatprep.mubr.msk.bf16.mxu0 %vm461_vm1, %v2285_v7  ;;  %v2292_v16 = vld [vmem:[%s2384_s30 + $0x48] sm:$0xff]   ;;  %v2293_v17 = vld [vmem:[%s2384_s30 + $0x50] sm:$0xff]   ;;  %v2294_v18 = vld [vmem:[%s2384_s30 + $0x58] sm:$0xff]   ;;  %s2575_s27 = scalar_lea.vmem %s2713_s5, %s1962_s19 }
  0x12   : > { %2260 = vmatprep.subr.bf16.mxu1 %v2317_v4  ;;  %2179 = vmatpush3.bf16.msra.mxu0 %v2315_v2  ;;  %v2295_v19 = vld [vmem:[%s2384_s30 + $0x60] sm:$0xff]   ;;  %v2296_v20 = vld [vmem:[%s2384_s30 + $0x68] sm:$0xff]   ;;  %v2297_v21 = vld [vmem:[%s2384_s30 + $0x70] sm:$0xff]  }
  0x13   : > { %2180 = vmatprep.subr.bf16.mxu0 %v2316_v3  ;;  %v2298_v22 = vld [vmem:[%s2384_s30 + $0x78] sm:$0xff]   ;;  %v2299_v23 = vld [vmem:[%s2384_s30 + $0x80] sm:$0xff]   ;;  %v2300_v24 = vld [vmem:[%s2384_s30 + $0x88] sm:$0xff]  }
  0x14   : > { %v2301_v25 = vld [vmem:[%s2384_s30 + $0x90] sm:$0xff]   ;;  %v2302_v27 = vld [vmem:[%s2384_s30 + $0x98] sm:$0xff]   ;;  %v2303_v29 = vld [vmem:[%s2384_s30 + $0xa0] sm:$0xff]  }
  0x15   : > { %2268 = vmatpush3.bf16.msra.mxu1 %v2317_v4  ;;  %v2304_v31 = vld [vmem:[%s2384_s30 + $0xa8] sm:$0xff]   ;;  %v2305_v32 = vld [vmem:[%s2384_s30 + $0xb0] sm:$0xff]   ;;  %v2306_v33 = vld [vmem:[%s2384_s30 + $0xb8] sm:$0xff]  }
  0x16   : > { %2261 = vmatprep.subr.bf16.mxu1 %v2318_v8  ;;  %2181 = vmatpush3.bf16.msra.mxu0 %v2316_v3  ;;  %v2307_v34 = vld [vmem:[%s2384_s30 + $0xc0] sm:$0xff]   ;;  %v2308_v35 = vld [vmem:[%s2384_s30 + $0xc8] sm:$0xff]   ;;  %v2309_v36 = vld [vmem:[%s2384_s30 + $0xd0] sm:$0xff]  }
  0x17   : > { %2182 = vmatprep.subr.bf16.mxu0 %v2317_v4  ;;  %v2310_v37 = vld [vmem:[%s2384_s30 + $0xd8] sm:$0xff]   ;;  %v2311_v38 = vld [vmem:[%s2384_s30 + $0xe0] sm:$0xff]   ;;  %v2312_v39 = vld [vmem:[%s2384_s30 + $0xe8] sm:$0xff]  }
  0x18   : > { %2119 = vmatmul.mubr.msk.bf16.gmra.mxu0 %vm461_vm1, %v2286_v9  ;;  %v2313_v40 = vld [vmem:[%s2384_s30 + $0xf0] sm:$0xff]   ;;  %v2314_v41 = vld [vmem:[%s2384_s30 + $0xf8] sm:$0xff]   ;;  %v2471_v44 = vld [vmem:[%s2710_s2] ss:$0 sm:$0xff] }
  0x19   : > { %2269 = vmatpush3.bf16.msra.mxu1 %v2318_v8  ;;  %2122 = vmatprep.mubr.msk.bf16.mxu0 %vm461_vm1, %v2287_v10 }
  0x1a   : > { %2262 = vmatprep.subr.bf16.mxu1 %v2319_v11  ;;  %2183 = vmatpush3.bf16.msra.mxu0 %v2317_v4 }
  0x1b   : > { %2184 = vmatprep.subr.bf16.mxu0 %v2318_v8 }
  0x1d   : > { %2270 = vmatpush3.bf16.msra.mxu1 %v2319_v11 }
  0x1e   : > { %2185 = vmatpush3.bf16.msra.mxu0 %v2318_v8  ;;  %2263 = vmatprep.subr.bf16.mxu1 %v2320_v26 }
  0x1f   : > { %2186 = vmatprep.subr.bf16.mxu0 %v2319_v11 }
  0x20   : > { %2123 = vmatmul.mubr.msk.bf16.gmra.mxu0 %vm461_vm1, %v2288_v12 }
  0x21   : > { %2126 = vmatprep.mubr.msk.bf16.mxu0 %vm461_vm1, %v2289_v13  ;;  %2271 = vmatpush3.bf16.msra.mxu1 %v2320_v26 }
  0x22   : > { %2187 = vmatpush3.bf16.msra.mxu0 %v2319_v11  ;;  %2264 = vmatprep.subr.bf16.mxu1 %v2321_v28 }
  0x23   : > { %2188 = vmatprep.subr.bf16.mxu0 %v2320_v26 }
  0x25   : > { %2272 = vmatpush3.bf16.msra.mxu1 %v2321_v28 }
  0x26   : > { %2189 = vmatpush3.bf16.msra.mxu0 %v2320_v26  ;;  %2265 = vmatprep.subr.bf16.mxu1 %v2322_v30 }
  0x27   : > { %2190 = vmatprep.subr.bf16.mxu0 %v2321_v28 }
  0x28   : > { %2127 = vmatmul.mubr.msk.bf16.gmra.mxu0 %vm461_vm1, %v2290_v14 }
  0x29   : > { %2130 = vmatprep.mubr.msk.bf16.mxu0 %vm461_vm1, %v2291_v15  ;;  %2273 = vmatpush3.bf16.msra.mxu1 %v2322_v30 }
  0x2a   : > { %2191 = vmatpush3.bf16.msra.mxu0 %v2321_v28 }
  0x2b   : > { %2192 = vmatprep.subr.bf16.mxu0 %v2322_v30 }
  0x2e   : > { %2193 = vmatpush3.bf16.msra.mxu0 %v2322_v30 }
  0x30   : > { %2131 = vmatmul.mubr.msk.bf16.gmra.mxu0 %vm461_vm1, %v2292_v16 }
  0x31   : > { %2134 = vmatprep.mubr.msk.bf16.mxu0 %vm461_vm1, %v2293_v17 }
  0x38   : > { %2135 = vmatmul.mubr.msk.bf16.gmra.mxu0 %vm461_vm1, %v2294_v18 }
  0x39   : > { %2138 = vmatprep.mubr.msk.bf16.mxu0 %vm461_vm1, %v2295_v19 }
  0x40   : > { %2139 = vmatmul.mubr.msk.bf16.gmra.mxu0 %vm461_vm1, %v2296_v20 }
  0x41   : > { %2142 = vmatprep.mubr.msk.bf16.mxu0 %vm461_vm1, %v2297_v21 }
  0x48   : > { %2143 = vmatmul.mubr.msk.bf16.gmra.mxu0 %vm461_vm1, %v2298_v22 }
  0x49   : > { %2146 = vmatprep.mubr.msk.bf16.mxu0 %vm461_vm1, %v2299_v23 }
  0x50   : > { %2147 = vmatmul.mubr.msk.bf16.gmra.mxu0 %vm461_vm1, %v2300_v24 }
  0x51   : > { %2150 = vmatprep.mubr.msk.bf16.mxu0 %vm461_vm1, %v2301_v25 }
  0x58   : > { %2151 = vmatmul.mubr.msk.bf16.gmra.mxu0 %vm461_vm1, %v2302_v27 }
  0x59   : > { %2154 = vmatprep.mubr.msk.bf16.mxu0 %vm461_vm1, %v2303_v29 }
  0x60   : > { %2155 = vmatmul.mubr.msk.bf16.gmra.mxu0 %vm461_vm1, %v2304_v31 }
  0x61   : > { %2158 = vmatprep.mubr.msk.bf16.mxu0 %vm461_vm1, %v2305_v32 }
  0x68   : > { %2159 = vmatmul.mubr.msk.bf16.gmra.mxu0 %vm461_vm1, %v2306_v33 }
  0x69   : > { %2162 = vmatprep.mubr.msk.bf16.mxu0 %vm461_vm1, %v2307_v34 }
  0x70   : > { %2163 = vmatmul.mubr.msk.bf16.gmra.mxu0 %vm461_vm1, %v2308_v35 }
  0x71   : > { %2166 = vmatprep.mubr.msk.bf16.mxu0 %vm461_vm1, %v2309_v36 }
  0x78   : > { %2167 = vmatmul.mubr.msk.bf16.gmra.mxu0 %vm461_vm1, %v2310_v37 }
  0x79   : > { %2170 = vmatprep.mubr.msk.bf16.mxu0 %vm461_vm1, %v2311_v38 }
  0x80   : > { %2171 = vmatmul.mubr.msk.bf16.gmra.mxu0 %vm461_vm1, %v2312_v39 }
  0x81   : > { %2174 = vmatprep.mubr.msk.bf16.mxu0 %vm461_vm1, %v2313_v40 }
  0x88   : > { %2175 = vmatmul.mubr.msk.bf16.gmra.mxu0 %vm461_vm1, %v2314_v41 }
  0xd0   : > { %v2116_v42 = vpop.f32.mrf.mxu0 }
  0xd1   : > { %v605_v48 = vadd.f32 %v2116_v42, %v2471_v44 }
  0xd2   : > { %v596_v43 = vpop.f32.mrf.mxu0 }
  0xd3   : > { %v597_v46 = vadd.f32 %v2471_v44, %v596_v43  ;;  %v853_v55 = vmax.f32 %v605_v48, 0.0 }
  0xd4   : > { %v2117_v45 = vpop.f32.mrf.mxu0 }
  0xd5   : > { %v608_v47 = vadd.f32 %v2117_v45, %v2471_v44  ;;  %v851_v53 = vmax.f32 %v597_v46, 0.0 }
  0xd6   : > { %v599_v49 = vpop.f32.mrf.mxu0 }
  0xd7   : > { %v600_v50 = vadd.f32 %v2471_v44, %v599_v49  ;;  %v854_v51 = vmax.f32 %v608_v47, 0.0 }
  0xd8   : > { %v2120_v52 = vpop.f32.mrf.mxu0 }
  0xd9   : > { %v852_v54 = vmax.f32 %v600_v50, 0.0  ;;  %v916_v58 = vpack.c.bf16 %v854_v51, %v853_v55  ;;  %v621_v62 = vadd.f32 %v2120_v52, %v2471_v44 }
  0xda   : > { %v612_v56 = vpop.f32.mrf.mxu0 }
  0xdb   : > { %v915_v57 = vpack.c.bf16 %v852_v54, %v851_v53  ;;  %v613_v60 = vadd.f32 %v2471_v44, %v612_v56  ;;  %v857_v5 = vmax.f32 %v621_v62, 0.0 }
  0xdc   : > { %v2121_v59 = vpop.f32.mrf.mxu0 }
  0xdd   : > { %v624_v61 = vadd.f32 %v2121_v59, %v2471_v44  ;;  %2194 = vmatprep.mubr.bf16.mxu0 %v915_v57  ;;  %v855_v3 = vmax.f32 %v613_v60, 0.0 }
  0xde   : > { %v615_v63 = vpop.f32.mrf.mxu0  ;;  %2195 = vmatmul.mubr.bf16.vlgmr.msra.gmra.mxu0 %v916_v58 }
  0xdf   : > { %v616_v0 = vadd.f32 %v2471_v44, %v615_v63  ;;  %v858_v1 = vmax.f32 %v624_v61, 0.0 }
  0xe0   : > { %v2124_v2 = vpop.f32.mrf.mxu0 }
  0xe1   : > { %v856_v4 = vmax.f32 %v616_v0, 0.0  ;;  %v918_v8 = vpack.c.bf16 %v858_v1, %v857_v5  ;;  %v637_v12 = vadd.f32 %v2124_v2, %v2471_v44 }
  0xe2   : > { %v628_v6 = vpop.f32.mrf.mxu0 }
  0xe3   : > { %v917_v7 = vpack.c.bf16 %v856_v4, %v855_v3  ;;  %v629_v10 = vadd.f32 %v2471_v44, %v628_v6  ;;  %v861_v19 = vmax.f32 %v637_v12, 0.0 }
  0xe4   : > { %v2125_v9 = vpop.f32.mrf.mxu0 }
  0xe5   : > { %v640_v11 = vadd.f32 %v2125_v9, %v2471_v44  ;;  %2198 = vmatprep.mubr.bf16.mxu1 %v917_v7  ;;  %v859_v17 = vmax.f32 %v629_v10, 0.0 }
  0xe6   : > { %v631_v13 = vpop.f32.mrf.mxu0  ;;  %2199 = vmatmul.mubr.bf16.vlgmr.msra.gmra.mxu1 %v918_v8 }
  0xe7   : > { %v632_v14 = vadd.f32 %v2471_v44, %v631_v13  ;;  %v862_v15 = vmax.f32 %v640_v11, 0.0 }
  0xe8   : > { %v2128_v16 = vpop.f32.mrf.mxu0 }
  0xe9   : > { %v860_v18 = vmax.f32 %v632_v14, 0.0  ;;  %v920_v22 = vpack.c.bf16 %v862_v15, %v861_v19  ;;  %v653_v26 = vadd.f32 %v2128_v16, %v2471_v44 }
  0xea   : > { %v644_v20 = vpop.f32.mrf.mxu0 }
  0xeb   : > { %v919_v21 = vpack.c.bf16 %v860_v18, %v859_v17  ;;  %v645_v24 = vadd.f32 %v2471_v44, %v644_v20  ;;  %v865_v33 = vmax.f32 %v653_v26, 0.0 }
  0xec   : > { %v2129_v23 = vpop.f32.mrf.mxu0 }
  0xed   : > { %v656_v25 = vadd.f32 %v2129_v23, %v2471_v44  ;;  %2202 = vmatprep.mubr.bf16.mxu1 %v919_v21  ;;  %v863_v31 = vmax.f32 %v645_v24, 0.0 }
  0xee   : > { %v647_v27 = vpop.f32.mrf.mxu0  ;;  %2203 = vmatmul.mubr.bf16.gmra.mxu1 %v920_v22 }
  0xef   : > { %v648_v28 = vadd.f32 %v2471_v44, %v647_v27  ;;  %v866_v29 = vmax.f32 %v656_v25, 0.0 }
  0xf0   : > { %v2132_v30 = vpop.f32.mrf.mxu0 }
  0xf1   : > { %v864_v32 = vmax.f32 %v648_v28, 0.0  ;;  %v922_v36 = vpack.c.bf16 %v866_v29, %v865_v33  ;;  %v669_v40 = vadd.f32 %v2132_v30, %v2471_v44 }
  0xf2   : > { %v660_v34 = vpop.f32.mrf.mxu0 }
  0xf3   : > { %v921_v35 = vpack.c.bf16 %v864_v32, %v863_v31  ;;  %v661_v38 = vadd.f32 %v2471_v44, %v660_v34  ;;  %v869_v48 = vmax.f32 %v669_v40, 0.0 }
  0xf4   : > { %v2133_v37 = vpop.f32.mrf.mxu0 }
  0xf5   : > { %v672_v39 = vadd.f32 %v2133_v37, %v2471_v44  ;;  %2206 = vmatprep.mubr.bf16.mxu1 %v921_v35  ;;  %v867_v46 = vmax.f32 %v661_v38, 0.0 }
  0xf6   : > { %v663_v41 = vpop.f32.mrf.mxu0  ;;  %2207 = vmatmul.mubr.bf16.gmra.mxu1 %v922_v36 }
  0xf7   : > { %v664_v42 = vadd.f32 %v2471_v44, %v663_v41  ;;  %v870_v43 = vmax.f32 %v672_v39, 0.0 }
  0xf8   : > { %v2136_v45 = vpop.f32.mrf.mxu0 }
  0xf9   : > { %v868_v47 = vmax.f32 %v664_v42, 0.0  ;;  %v924_v51 = vpack.c.bf16 %v870_v43, %v869_v48  ;;  %v685_v55 = vadd.f32 %v2136_v45, %v2471_v44 }
  0xfa   : > { %v676_v49 = vpop.f32.mrf.mxu0 }
  0xfb   : > { %v923_v50 = vpack.c.bf16 %v868_v47, %v867_v46  ;;  %v677_v53 = vadd.f32 %v2471_v44, %v676_v49  ;;  %v873_v62 = vmax.f32 %v685_v55, 0.0 }
  0xfc   : > { %v2137_v52 = vpop.f32.mrf.mxu0 }
  0xfd   : > { %v688_v54 = vadd.f32 %v2137_v52, %v2471_v44  ;;  %2210 = vmatprep.mubr.bf16.mxu1 %v923_v50  ;;  %v871_v60 = vmax.f32 %v677_v53, 0.0 }
  0xfe   : > { %v679_v56 = vpop.f32.mrf.mxu0  ;;  %2211 = vmatmul.mubr.bf16.gmra.mxu1 %v924_v51 }
  0xff   : > { %v680_v57 = vadd.f32 %v2471_v44, %v679_v56  ;;  %v874_v58 = vmax.f32 %v688_v54, 0.0 }
 0x100   : > { %v2140_v59 = vpop.f32.mrf.mxu0 }
 0x101   : > { %v872_v61 = vmax.f32 %v680_v57, 0.0  ;;  %v926_v1 = vpack.c.bf16 %v874_v58, %v873_v62  ;;  %v701_v5 = vadd.f32 %v2140_v59, %v2471_v44 }
 0x102   : > { %v692_v63 = vpop.f32.mrf.mxu0 }
 0x103   : > { %v925_v0 = vpack.c.bf16 %v872_v61, %v871_v60  ;;  %v693_v3 = vadd.f32 %v2471_v44, %v692_v63  ;;  %v877_v12 = vmax.f32 %v701_v5, 0.0 }
 0x104   : > { %v2141_v2 = vpop.f32.mrf.mxu0 }
 0x105   : > { %v704_v4 = vadd.f32 %v2141_v2, %v2471_v44  ;;  %2214 = vmatprep.mubr.bf16.mxu1 %v925_v0  ;;  %v875_v10 = vmax.f32 %v693_v3, 0.0 }
 0x106   : > { %v695_v6 = vpop.f32.mrf.mxu0  ;;  %2215 = vmatmul.mubr.bf16.gmra.mxu1 %v926_v1 }
 0x107   : > { %v696_v7 = vadd.f32 %v2471_v44, %v695_v6  ;;  %v878_v8 = vmax.f32 %v704_v4, 0.0 }
 0x108   : > { %v2144_v9 = vpop.f32.mrf.mxu0 }
 0x109   : > { %v876_v11 = vmax.f32 %v696_v7, 0.0  ;;  %v928_v15 = vpack.c.bf16 %v878_v8, %v877_v12  ;;  %v717_v19 = vadd.f32 %v2144_v9, %v2471_v44 }
 0x10a   : > { %v708_v13 = vpop.f32.mrf.mxu0 }
 0x10b   : > { %v927_v14 = vpack.c.bf16 %v876_v11, %v875_v10  ;;  %v709_v17 = vadd.f32 %v2471_v44, %v708_v13  ;;  %v881_v26 = vmax.f32 %v717_v19, 0.0 }
 0x10c   : > { %v2145_v16 = vpop.f32.mrf.mxu0 }
 0x10d   : > { %v720_v18 = vadd.f32 %v2145_v16, %v2471_v44  ;;  %2218 = vmatprep.mubr.bf16.mxu1 %v927_v14  ;;  %v879_v24 = vmax.f32 %v709_v17, 0.0 }
 0x10e   : > { %v711_v20 = vpop.f32.mrf.mxu0  ;;  %2219 = vmatmul.mubr.bf16.gmra.mxu1 %v928_v15 }
 0x10f   : > { %v712_v21 = vadd.f32 %v2471_v44, %v711_v20  ;;  %v882_v22 = vmax.f32 %v720_v18, 0.0 }
 0x110   : > { %v2148_v23 = vpop.f32.mrf.mxu0 }
 0x111   : > { %v880_v25 = vmax.f32 %v712_v21, 0.0  ;;  %v930_v29 = vpack.c.bf16 %v882_v22, %v881_v26  ;;  %v733_v33 = vadd.f32 %v2148_v23, %v2471_v44 }
 0x112   : > { %v724_v27 = vpop.f32.mrf.mxu0 }
 0x113   : > { %v929_v28 = vpack.c.bf16 %v880_v25, %v879_v24  ;;  %v725_v31 = vadd.f32 %v2471_v44, %v724_v27  ;;  %v885_v40 = vmax.f32 %v733_v33, 0.0 }
 0x114   : > { %v2149_v30 = vpop.f32.mrf.mxu0 }
 0x115   : > { %v736_v32 = vadd.f32 %v2149_v30, %v2471_v44  ;;  %2222 = vmatprep.mubr.bf16.mxu1 %v929_v28  ;;  %v883_v38 = vmax.f32 %v725_v31, 0.0 }
 0x116   : > { %v727_v34 = vpop.f32.mrf.mxu0  ;;  %2223 = vmatmul.mubr.bf16.gmra.mxu1 %v930_v29 }
 0x117   : > { %v728_v35 = vadd.f32 %v2471_v44, %v727_v34  ;;  %v886_v36 = vmax.f32 %v736_v32, 0.0 }
 0x118   : > { %v2152_v37 = vpop.f32.mrf.mxu0 }
 0x119   : > { %v884_v39 = vmax.f32 %v728_v35, 0.0  ;;  %v932_v43 = vpack.c.bf16 %v886_v36, %v885_v40  ;;  %v749_v48 = vadd.f32 %v2152_v37, %v2471_v44 }
 0x11a   : > { %v740_v41 = vpop.f32.mrf.mxu0 }
 0x11b   : > { %v931_v42 = vpack.c.bf16 %v884_v39, %v883_v38  ;;  %v741_v46 = vadd.f32 %v2471_v44, %v740_v41  ;;  %v889_v55 = vmax.f32 %v749_v48, 0.0 }
 0x11c   : > { %v2153_v45 = vpop.f32.mrf.mxu0 }
 0x11d   : > { %v752_v47 = vadd.f32 %v2153_v45, %v2471_v44  ;;  %2226 = vmatprep.mubr.bf16.mxu1 %v931_v42  ;;  %v887_v53 = vmax.f32 %v741_v46, 0.0 }
 0x11e   : > { %v743_v49 = vpop.f32.mrf.mxu0  ;;  %2227 = vmatmul.mubr.bf16.gmra.mxu1 %v932_v43 }
 0x11f   : > { %v744_v50 = vadd.f32 %v2471_v44, %v743_v49  ;;  %v890_v51 = vmax.f32 %v752_v47, 0.0 }
 0x120   : > { %v2156_v52 = vpop.f32.mrf.mxu0 }
 0x121   : > { %v888_v54 = vmax.f32 %v744_v50, 0.0  ;;  %v934_v58 = vpack.c.bf16 %v890_v51, %v889_v55  ;;  %v765_v62 = vadd.f32 %v2156_v52, %v2471_v44 }
 0x122   : > { %v756_v56 = vpop.f32.mrf.mxu0 }
 0x123   : > { %v933_v57 = vpack.c.bf16 %v888_v54, %v887_v53  ;;  %v757_v60 = vadd.f32 %v2471_v44, %v756_v56  ;;  %v893_v5 = vmax.f32 %v765_v62, 0.0 }
 0x124   : > { %v2157_v59 = vpop.f32.mrf.mxu0 }
 0x125   : > { %v768_v61 = vadd.f32 %v2157_v59, %v2471_v44  ;;  %2230 = vmatprep.mubr.bf16.mxu1 %v933_v57  ;;  %v891_v3 = vmax.f32 %v757_v60, 0.0 }
 0x126   : > { %v759_v63 = vpop.f32.mrf.mxu0  ;;  %2231 = vmatmul.mubr.bf16.gmra.mxu1 %v934_v58 }
 0x127   : > { %v760_v0 = vadd.f32 %v2471_v44, %v759_v63  ;;  %v894_v1 = vmax.f32 %v768_v61, 0.0 }
 0x128   : > { %v2160_v2 = vpop.f32.mrf.mxu0 }
 0x129   : > { %v892_v4 = vmax.f32 %v760_v0, 0.0  ;;  %v936_v8 = vpack.c.bf16 %v894_v1, %v893_v5  ;;  %v781_v12 = vadd.f32 %v2160_v2, %v2471_v44 }
 0x12a   : > { %v772_v6 = vpop.f32.mrf.mxu0 }
 0x12b   : > { %v935_v7 = vpack.c.bf16 %v892_v4, %v891_v3  ;;  %v773_v10 = vadd.f32 %v2471_v44, %v772_v6  ;;  %v897_v19 = vmax.f32 %v781_v12, 0.0 }
 0x12c   : > { %v2161_v9 = vpop.f32.mrf.mxu0 }
 0x12d   : > { %v784_v11 = vadd.f32 %v2161_v9, %v2471_v44  ;;  %2234 = vmatprep.mubr.bf16.mxu1 %v935_v7  ;;  %v895_v17 = vmax.f32 %v773_v10, 0.0 }
 0x12e   : > { %v775_v13 = vpop.f32.mrf.mxu0  ;;  %2235 = vmatmul.mubr.bf16.gmra.mxu1 %v936_v8 }
 0x12f   : > { %v776_v14 = vadd.f32 %v2471_v44, %v775_v13  ;;  %v898_v15 = vmax.f32 %v784_v11, 0.0 }
 0x130   : > { %v2164_v16 = vpop.f32.mrf.mxu0 }
 0x131   : > { %v896_v18 = vmax.f32 %v776_v14, 0.0  ;;  %v938_v22 = vpack.c.bf16 %v898_v15, %v897_v19  ;;  %v797_v26 = vadd.f32 %v2164_v16, %v2471_v44  ;;  %v2540_v14 = vld [vmem:[%s2712_s4] ss:$0 sm:$0xff] }
 0x132   : > { %v788_v20 = vpop.f32.mrf.mxu0 }
 0x133   : > { %v937_v21 = vpack.c.bf16 %v896_v18, %v895_v17  ;;  %v789_v24 = vadd.f32 %v2471_v44, %v788_v20  ;;  %v901_v33 = vmax.f32 %v797_v26, 0.0 }
 0x134   : > { %v2165_v23 = vpop.f32.mrf.mxu0 }
 0x135   : > { %v800_v25 = vadd.f32 %v2165_v23, %v2471_v44  ;;  %2238 = vmatprep.mubr.bf16.mxu1 %v937_v21  ;;  %v899_v31 = vmax.f32 %v789_v24, 0.0 }
 0x136   : > { %v791_v27 = vpop.f32.mrf.mxu0  ;;  %2239 = vmatmul.mubr.bf16.gmra.mxu1 %v938_v22 }
 0x137   : > { %v792_v28 = vadd.f32 %v2471_v44, %v791_v27  ;;  %v902_v29 = vmax.f32 %v800_v25, 0.0 }
 0x138   : > { %v2168_v30 = vpop.f32.mrf.mxu0 }
 0x139   : > { %v900_v32 = vmax.f32 %v792_v28, 0.0  ;;  %v940_v36 = vpack.c.bf16 %v902_v29, %v901_v33  ;;  %v813_v40 = vadd.f32 %v2168_v30, %v2471_v44 }
 0x13a   : > { %v804_v34 = vpop.f32.mrf.mxu0 }
 0x13b   : > { %v939_v35 = vpack.c.bf16 %v900_v32, %v899_v31  ;;  %v805_v38 = vadd.f32 %v2471_v44, %v804_v34  ;;  %v905_v48 = vmax.f32 %v813_v40, 0.0 }
 0x13c   : > { %v2169_v37 = vpop.f32.mrf.mxu0 }
 0x13d   : > { %v816_v39 = vadd.f32 %v2169_v37, %v2471_v44  ;;  %2242 = vmatprep.mubr.bf16.mxu1 %v939_v35  ;;  %v903_v46 = vmax.f32 %v805_v38, 0.0 }
 0x13e   : > { %v807_v41 = vpop.f32.mrf.mxu0  ;;  %2243 = vmatmul.mubr.bf16.gmra.mxu1 %v940_v36 }
 0x13f   : > { %v808_v42 = vadd.f32 %v2471_v44, %v807_v41  ;;  %v906_v43 = vmax.f32 %v816_v39, 0.0 }
 0x140   : > { %v2172_v45 = vpop.f32.mrf.mxu0 }
 0x141   : > { %v904_v47 = vmax.f32 %v808_v42, 0.0  ;;  %v942_v51 = vpack.c.bf16 %v906_v43, %v905_v48  ;;  %v829_v55 = vadd.f32 %v2172_v45, %v2471_v44 }
 0x142   : > { %v820_v49 = vpop.f32.mrf.mxu0 }
 0x143   : > { %v941_v50 = vpack.c.bf16 %v904_v47, %v903_v46  ;;  %v821_v53 = vadd.f32 %v2471_v44, %v820_v49  ;;  %v909_v62 = vmax.f32 %v829_v55, 0.0 }
 0x144   : > { %v2173_v52 = vpop.f32.mrf.mxu0 }
 0x145   : > { %v832_v54 = vadd.f32 %v2173_v52, %v2471_v44  ;;  %2246 = vmatprep.mubr.bf16.mxu1 %v941_v50  ;;  %v907_v60 = vmax.f32 %v821_v53, 0.0 }
 0x146   : > { %v823_v56 = vpop.f32.mrf.mxu0  ;;  %2247 = vmatmul.mubr.bf16.gmra.mxu1 %v942_v51 }
 0x147   : > { %v824_v57 = vadd.f32 %v2471_v44, %v823_v56  ;;  %v910_v58 = vmax.f32 %v832_v54, 0.0 }
 0x148   : > { %v2176_v59 = vpop.f32.mrf.mxu0 }
 0x149   : > { %v908_v61 = vmax.f32 %v824_v57, 0.0  ;;  %v944_v1 = vpack.c.bf16 %v910_v58, %v909_v62  ;;  %v845_v5 = vadd.f32 %v2176_v59, %v2471_v44 }
 0x14a   : > { %v836_v63 = vpop.f32.mrf.mxu0 }
 0x14b   : > { %v943_v0 = vpack.c.bf16 %v908_v61, %v907_v60  ;;  %v837_v3 = vadd.f32 %v2471_v44, %v836_v63  ;;  %v913_v11 = vmax.f32 %v845_v5, 0.0 }
 0x14c   : > { %v2177_v2 = vpop.f32.mrf.mxu0 }
 0x14d   : > { %v848_v4 = vadd.f32 %v2177_v2, %v2471_v44  ;;  %2250 = vmatprep.mubr.bf16.mxu1 %v943_v0  ;;  %v911_v9 = vmax.f32 %v837_v3, 0.0 }
 0x14e   : > { %v839_v6 = vpop.f32.mrf.mxu0  ;;  %2251 = vmatmul.mubr.bf16.gmra.mxu1 %v944_v1 }
 0x14f   : > { %v840_v7 = vadd.f32 %v2471_v44, %v839_v6  ;;  %v914_v8 = vmax.f32 %v848_v4, 0.0 }
 0x151   : > { %v912_v10 = vmax.f32 %v840_v7, 0.0  ;;  %v946_v13 = vpack.c.bf16 %v914_v8, %v913_v11 }
 0x153   : > { %v945_v12 = vpack.c.bf16 %v912_v10, %v911_v9 }
 0x155   : > { %2254 = vmatprep.mubr.bf16.mxu1 %v945_v12 }
 0x156   : > { %2255 = vmatmul.mubr.bf16.gmra.mxu1 %v946_v13 }
 0x19e   : > { %v2196_v15 = vpop.f32.mrf.mxu0 }
 0x19f   : > { %v1061_v16 = vadd.f32 %v2196_v15, %v2540_v14 }
 0x1a0   : > { %v1052_v17 = vpop.f32.mrf.mxu0 }
 0x1a1   : > { %v1309_v18 = vmax.f32 %v1061_v16, 0.0  ;;  %v1053_v44 = vadd.f32 %v2540_v14, %v1052_v17 }
 0x1a2   : > { %v2197_v19 = vpop.f32.mrf.mxu0 }
 0x1a3   : > { %v1383_v20 = vrot.slane %v1309_v18, 4  ;;  %v1307_v21 = vmax.f32 %v1053_v44, 0.0  ;;  %v1064_v22 = vadd.f32 %v2197_v19, %v2540_v14 }
 0x1a4   : > { %v1055_v23 = vpop.f32.mrf.mxu0 }
 0x1a5   : > { %v1384_v24 = vmax.f32 %v1309_v18, %v1383_v20  ;;  %v1371_v25 = vrot.slane %v1307_v21, 4  ;;  %v1310_v26 = vmax.f32 %v1064_v22, 0.0  ;;  %v1056_v27 = vadd.f32 %v2540_v14, %v1055_v23 }
 0x1a6   : > { %v2200_v28 = vpop.f32.mrf.mxu1 }
 0x1a7   : > { %v1385_v29 = vrot.slane %v1384_v24, 2  ;;  %v1372_v30 = vmax.f32 %v1307_v21, %v1371_v25  ;;  %v1389_v31 = vrot.slane %v1310_v26, 4  ;;  %v1308_v32 = vmax.f32 %v1056_v27, 0.0 }
 0x1a8   : > { %v1077_v33 = vadd.f32 %v2200_v28, %v2540_v14  ;;  %v1068_v34 = vpop.f32.mrf.mxu1 }
 0x1a9   : > { %v1386_v35 = vmax.f32 %v1384_v24, %v1385_v29  ;;  %v1373_v36 = vrot.slane %v1372_v30, 2  ;;  %v1390_v37 = vmax.f32 %v1310_v26, %v1389_v31  ;;  %v1377_v38 = vrot.slane %v1308_v32, 4 }
 0x1aa   : > { %v1313_v39 = vmax.f32 %v1077_v33, 0.0  ;;  %v1069_v40 = vadd.f32 %v2540_v14, %v1068_v34  ;;  %v2201_v41 = vpop.f32.mrf.mxu1 }
 0x1ab   : > { %v1387_v42 = vrot.slane %v1386_v35, 1  ;;  %v1374_v43 = vmax.f32 %v1372_v30, %v1373_v36  ;;  %v1391_v45 = vrot.slane %v1390_v37, 2  ;;  %v1378_v46 = vmax.f32 %v1308_v32, %v1377_v38 }
 0x1ac   : > { %v1407_v47 = vrot.slane %v1313_v39, 4  ;;  %v1311_v48 = vmax.f32 %v1069_v40, 0.0  ;;  %v1080_v49 = vadd.f32 %v2201_v41, %v2540_v14  ;;  %v1071_v50 = vpop.f32.mrf.mxu1 }
 0x1ad   : > { %v1388_v51 = vmax.f32 %v1386_v35, %v1387_v42  ;;  %v1375_v52 = vrot.slane %v1374_v43, 1  ;;  %v1392_v53 = vmax.f32 %v1390_v37, %v1391_v45  ;;  %v1379_v54 = vrot.slane %v1378_v46, 2 }
 0x1ae   : > { %v1408_v55 = vmax.f32 %v1313_v39, %v1407_v47  ;;  %v1395_v56 = vrot.slane %v1311_v48, 4  ;;  %v1314_v57 = vmax.f32 %v1080_v49, 0.0  ;;  %v1072_v58 = vadd.f32 %v2540_v14, %v1071_v50  ;;  %v2204_v59 = vpop.f32.mrf.mxu1 }
 0x1af   : > { %v1376_v60 = vmax.f32 %v1374_v43, %v1375_v52  ;;  %v1393_v61 = vrot.slane %v1392_v53, 1  ;;  %v1380_v62 = vmax.f32 %v1378_v46, %v1379_v54  ;;  %v1093_v63 = vadd.f32 %v2204_v59, %v2540_v14 }
 0x1b0   : > { %v1409_v0 = vrot.slane %v1408_v55, 2  ;;  %v1396_v1 = vmax.f32 %v1311_v48, %v1395_v56  ;;  %v1413_v2 = vrot.slane %v1314_v57, 4  ;;  %v1312_v3 = vmax.f32 %v1072_v58, 0.0  ;;  %v1084_v4 = vpop.f32.mrf.mxu1 }
 0x1b1   : > { %v1394_v5 = vmax.f32 %v1392_v53, %v1393_v61  ;;  %v1381_v6 = vrot.slane %v1380_v62, 1  ;;  %v1317_v7 = vmax.f32 %v1093_v63, 0.0  ;;  %v1085_v8 = vadd.f32 %v2540_v14, %v1084_v4 }
 0x1b2   : > { %v1410_v9 = vmax.f32 %v1408_v55, %v1409_v0  ;;  %v1397_v10 = vrot.slane %v1396_v1, 2  ;;  %v1414_v11 = vmax.f32 %v1314_v57, %v1413_v2  ;;  %v1401_v12 = vrot.slane %v1312_v3, 4  ;;  %v2205_v13 = vpop.f32.mrf.mxu1 }
 0x1b3   : > { %v1382_v15 = vmax.f32 %v1380_v62, %v1381_v6  ;;  %v1431_v16 = vrot.slane %v1317_v7, 4  ;;  %v1315_v17 = vmax.f32 %v1085_v8, 0.0  ;;  %v1096_v18 = vadd.f32 %v2205_v13, %v2540_v14 }
 0x1b4   : > { %v1411_v44 = vrot.slane %v1410_v9, 1  ;;  %v1398_v19 = vmax.f32 %v1396_v1, %v1397_v10  ;;  %v1415_v20 = vrot.slane %v1414_v11, 2  ;;  %v1402_v21 = vmax.f32 %v1312_v3, %v1401_v12  ;;  %v1087_v22 = vpop.f32.mrf.mxu1 }
 0x1b5   : > { %v1820_v23 = vsel %vm1819_vm2, %v1382_v15, %v1376_v60  ;;  %v1432_v24 = vmax.f32 %v1317_v7, %v1431_v16  ;;  %v1419_v25 = vrot.slane %v1315_v17, 4  ;;  %v1318_v26 = vmax.f32 %v1096_v18, 0.0 }
 0x1b6   : > { %v1822_v27 = vsel %vm1821_vm3, %v1388_v51, %v1820_v23  ;;  %v1412_v28 = vmax.f32 %v1410_v9, %v1411_v44  ;;  %v1399_v29 = vrot.slane %v1398_v19, 1  ;;  %v1416_v30 = vmax.f32 %v1414_v11, %v1415_v20  ;;  %v2208_v31 = vpop.f32.mrf.mxu1 }
 0x1b7   : > { %v1824_v32 = vsel %vm1823_vm4, %v1394_v5, %v1822_v27  ;;  %v1403_v33 = vrot.slane %v1402_v21, 2  ;;  %v1433_v34 = vrot.slane %v1432_v24, 2  ;;  %v1420_v35 = vmax.f32 %v1315_v17, %v1419_v25 }
 0x1b8   : > { %v1400_v36 = vmax.f32 %v1398_v19, %v1399_v29  ;;  %v1417_v37 = vrot.slane %v1416_v30, 1  ;;  %v1437_v38 = vrot.slane %v1318_v26, 4  ;;  %v1088_v39 = vadd.f32 %v2540_v14, %v1087_v22  ;;  %v1100_v40 = vpop.f32.mrf.mxu1 }
 0x1b9   : > { %v1404_v41 = vmax.f32 %v1402_v21, %v1403_v33  ;;  %v1434_v42 = vmax.f32 %v1432_v24, %v1433_v34  ;;  %v1421_v43 = vrot.slane %v1420_v35, 2  ;;  %v1109_v45 = vadd.f32 %v2208_v31, %v2540_v14 }
 0x1ba   : > { %v1826_v46 = vsel %vm1825_vm5, %v1400_v36, %v1824_v32  ;;  %v1418_v47 = vmax.f32 %v1416_v30, %v1417_v37  ;;  %v1438_v48 = vmax.f32 %v1318_v26, %v1437_v38  ;;  %v1316_v49 = vmax.f32 %v1088_v39, 0.0  ;;  %v2209_v50 = vpop.f32.mrf.mxu1 }
 0x1bb   : > { %v1405_v51 = vrot.slane %v1404_v41, 1  ;;  %v1435_v52 = vrot.slane %v1434_v42, 1  ;;  %v1422_v53 = vmax.f32 %v1420_v35, %v1421_v43  ;;  %v1321_v54 = vmax.f32 %v1109_v45, 0.0 }
 0x1bc   : > { %v1439_v55 = vrot.slane %v1438_v48, 2  ;;  %v1425_v56 = vrot.slane %v1316_v49, 4  ;;  %v1101_v57 = vadd.f32 %v2540_v14, %v1100_v40  ;;  %v1112_v58 = vadd.f32 %v2209_v50, %v2540_v14  ;;  %v1103_v59 = vpop.f32.mrf.mxu1 }
 0x1bd   : > { %v1406_v60 = vmax.f32 %v1404_v41, %v1405_v51  ;;  %v1436_v61 = vmax.f32 %v1434_v42, %v1435_v52  ;;  %v1423_v62 = vrot.slane %v1422_v53, 1  ;;  %v1455_v63 = vrot.slane %v1321_v54, 4 }
 0x1be   : > { %v1440_v0 = vmax.f32 %v1438_v48, %v1439_v55  ;;  %v1426_v1 = vmax.f32 %v1316_v49, %v1425_v56  ;;  %v1319_v2 = vmax.f32 %v1101_v57, 0.0  ;;  %v1322_v3 = vmax.f32 %v1112_v58, 0.0  ;;  %v2212_v4 = vpop.f32.mrf.mxu1 }
 0x1bf   : > { %v1828_v5 = vsel %vm1827_vm6, %v1406_v60, %v1826_v46  ;;  %v1424_v6 = vmax.f32 %v1422_v53, %v1423_v62  ;;  %v1456_v7 = vmax.f32 %v1321_v54, %v1455_v63  ;;  %v1104_v8 = vadd.f32 %v2540_v14, %v1103_v59 }
 0x1c0   : > { %v1830_v9 = vsel %vm1829_vm7, %v1412_v28, %v1828_v5  ;;  %v1441_v10 = vrot.slane %v1440_v0, 1  ;;  %v1427_v11 = vrot.slane %v1426_v1, 2  ;;  %v1443_v12 = vrot.slane %v1319_v2, 4  ;;  %v1116_v13 = vpop.f32.mrf.mxu1 }
 0x1c1   : > { %v1832_v15 = vsel %vm1831_vm8, %v1418_v47, %v1830_v9  ;;  %v1457_v16 = vrot.slane %v1456_v7, 2  ;;  %v1461_v17 = vrot.slane %v1322_v3, 4  ;;  %v1320_v18 = vmax.f32 %v1104_v8, 0.0 }
 0x1c2   : > { %1890 = vst [vmem:[%s2575_s27] sm:$0xff] %v1832_v15  ;;  %v1442_v44 = vmax.f32 %v1440_v0, %v1441_v10  ;;  %v1428_v19 = vmax.f32 %v1426_v1, %v1427_v11  ;;  %v1444_v20 = vmax.f32 %v1319_v2, %v1443_v12  ;;  %v1125_v21 = vadd.f32 %v2212_v4, %v2540_v14  ;;  %v2213_v22 = vpop.f32.mrf.mxu1 }
 0x1c3   : > { %v1458_v23 = vmax.f32 %v1456_v7, %v1457_v16  ;;  %v1462_v24 = vmax.f32 %v1322_v3, %v1461_v17  ;;  %v1449_v25 = vrot.slane %v1320_v18, 4  ;;  %v1117_v26 = vadd.f32 %v2540_v14, %v1116_v13 }
 0x1c4   : > { %v1429_v27 = vrot.slane %v1428_v19, 1  ;;  %v1445_v28 = vrot.slane %v1444_v20, 2  ;;  %v1325_v29 = vmax.f32 %v1125_v21, 0.0  ;;  %v1128_v30 = vadd.f32 %v2213_v22, %v2540_v14  ;;  %v1119_v31 = vpop.f32.mrf.mxu1 }
 0x1c5   : > { %v1459_v32 = vrot.slane %v1458_v23, 1  ;;  %v1463_v33 = vrot.slane %v1462_v24, 2  ;;  %v1450_v34 = vmax.f32 %v1320_v18, %v1449_v25  ;;  %v1323_v35 = vmax.f32 %v1117_v26, 0.0 }
 0x1c6   : > { %v1430_v36 = vmax.f32 %v1428_v19, %v1429_v27  ;;  %v1446_v37 = vmax.f32 %v1444_v20, %v1445_v28  ;;  %v1479_v38 = vrot.slane %v1325_v29, 4  ;;  %v1326_v39 = vmax.f32 %v1128_v30, 0.0  ;;  %v2216_v40 = vpop.f32.mrf.mxu1 }
 0x1c7   : > { %v1460_v41 = vmax.f32 %v1458_v23, %v1459_v32  ;;  %v1464_v42 = vmax.f32 %v1462_v24, %v1463_v33  ;;  %v1451_v43 = vrot.slane %v1450_v34, 2  ;;  %v1467_v45 = vrot.slane %v1323_v35, 4 }
 0x1c8   : > { %v1833_v46 = vsel %vm1819_vm2, %v1430_v36, %v1424_v6  ;;  %v1447_v47 = vrot.slane %v1446_v37, 1  ;;  %v1480_v48 = vmax.f32 %v1325_v29, %v1479_v38  ;;  %v1485_v49 = vrot.slane %v1326_v39, 4  ;;  %v1132_v50 = vpop.f32.mrf.mxu1 }
 0x1c9   : > { %v1834_v51 = vsel %vm1821_vm3, %v1436_v61, %v1833_v46  ;;  %v1465_v52 = vrot.slane %v1464_v42, 1  ;;  %v1452_v53 = vmax.f32 %v1450_v34, %v1451_v43  ;;  %v1468_v54 = vmax.f32 %v1323_v35, %v1467_v45 }
 0x1ca   : > { %v1448_v55 = vmax.f32 %v1446_v37, %v1447_v47  ;;  %v1835_v56 = vsel %vm1823_vm4, %v1442_v44, %v1834_v51  ;;  %v1481_v57 = vrot.slane %v1480_v48, 2  ;;  %v1486_v58 = vmax.f32 %v1326_v39, %v1485_v49  ;;  %v2217_v59 = vpop.f32.mrf.mxu1 }
 0x1cb   : > { %v1466_v60 = vmax.f32 %v1464_v42, %v1465_v52  ;;  %v1453_v62 = vrot.slane %v1452_v53, 1  ;;  %v1469_v63 = vrot.slane %v1468_v54, 2  ;;  %v1120_v0 = vadd.f32 %v2540_v14, %v1119_v31 }
 0x1cc   : > { %v1836_v1 = vsel %vm1825_vm5, %v1448_v55, %v1835_v56  ;;  %v1482_v2 = vmax.f32 %v1480_v48, %v1481_v57  ;;  %v1487_v3 = vrot.slane %v1486_v58, 2  ;;  %v1141_v61 = vadd.f32 %v2216_v40, %v2540_v14  ;;  %v1135_v4 = vpop.f32.mrf.mxu1 }
 0x1cd   : > { %v1454_v5 = vmax.f32 %v1452_v53, %v1453_v62  ;;  %v1470_v6 = vmax.f32 %v1468_v54, %v1469_v63  ;;  %v1324_v7 = vmax.f32 %v1120_v0, 0.0  ;;  %v1133_v8 = vadd.f32 %v2540_v14, %v1132_v50 }
 0x1ce   : > { %v1483_v9 = vrot.slane %v1482_v2, 1  ;;  %v1488_v10 = vmax.f32 %v1486_v58, %v1487_v3  ;;  %v1329_v11 = vmax.f32 %v1141_v61, 0.0  ;;  %v1144_v12 = vadd.f32 %v2217_v59, %v2540_v14  ;;  %v2220_v13 = vpop.f32.mrf.mxu1 }
 0x1cf   : > { %v1837_v15 = vsel %vm1827_vm6, %v1454_v5, %v1836_v1  ;;  %v1471_v16 = vrot.slane %v1470_v6, 1  ;;  %v1473_v17 = vrot.slane %v1324_v7, 4  ;;  %v1327_v18 = vmax.f32 %v1133_v8, 0.0 }
 0x1d0   : > { %v1838_v44 = vsel %vm1829_vm7, %v1460_v41, %v1837_v15  ;;  %v1484_v19 = vmax.f32 %v1482_v2, %v1483_v9  ;;  %v1503_v20 = vrot.slane %v1329_v11, 4  ;;  %v1148_v21 = vpop.f32.mrf.mxu1  ;;  %v1489_v23 = vrot.slane %v1488_v10, 1 }
 0x1d1   : > { %v1839_v22 = vsel %vm1831_vm8, %v1466_v60, %v1838_v44  ;;  %v1474_v24 = vmax.f32 %v1324_v7, %v1473_v17  ;;  %v1491_v25 = vrot.slane %v1327_v18, 4  ;;  %v1472_v26 = vmax.f32 %v1470_v6, %v1471_v16 }
 0x1d2   : > { %1891 = vst [vmem:[%s2575_s27 + $0x8] sm:$0xff] %v1839_v22  ;;  %v1504_v27 = vmax.f32 %v1329_v11, %v1503_v20  ;;  %v1330_v28 = vmax.f32 %v1144_v12, 0.0  ;;  %v1136_v29 = vadd.f32 %v2540_v14, %v1135_v4  ;;  %v2221_v30 = vpop.f32.mrf.mxu1  ;;  %v1157_v33 = vadd.f32 %v2220_v13, %v2540_v14 }
 0x1d3   : > { %v1475_v31 = vrot.slane %v1474_v24, 2  ;;  %v1492_v32 = vmax.f32 %v1327_v18, %v1491_v25  ;;  %v1149_v34 = vadd.f32 %v2540_v14, %v1148_v21  ;;  %v1160_v38 = vadd.f32 %v2221_v30, %v2540_v14 }
 0x1d4   : > { %v1505_v35 = vrot.slane %v1504_v27, 2  ;;  %v1509_v36 = vrot.slane %v1330_v28, 4  ;;  %v1328_v37 = vmax.f32 %v1136_v29, 0.0  ;;  %v1151_v39 = vpop.f32.mrf.mxu1  ;;  %v1333_v42 = vmax.f32 %v1157_v33, 0.0 }
 0x1d5   : > { %v1476_v40 = vmax.f32 %v1474_v24, %v1475_v31  ;;  %v1493_v41 = vrot.slane %v1492_v32, 2  ;;  %v1331_v43 = vmax.f32 %v1149_v34, 0.0  ;;  %v1334_v48 = vmax.f32 %v1160_v38, 0.0 }
 0x1d6   : > { %v1506_v45 = vmax.f32 %v1504_v27, %v1505_v35  ;;  %v1510_v46 = vmax.f32 %v1330_v28, %v1509_v36  ;;  %v1497_v47 = vrot.slane %v1328_v37, 4  ;;  %v2224_v49 = vpop.f32.mrf.mxu1  ;;  %v1527_v52 = vrot.slane %v1333_v42, 4 }
 0x1d7   : > { %v1477_v50 = vrot.slane %v1476_v40, 1  ;;  %v1494_v51 = vmax.f32 %v1492_v32, %v1493_v41  ;;  %v1515_v53 = vrot.slane %v1331_v43, 4  ;;  %v1490_v54 = vmax.f32 %v1488_v10, %v1489_v23 }
 0x1d8   : > { %v1511_v55 = vrot.slane %v1510_v46, 2  ;;  %v1498_v56 = vmax.f32 %v1328_v37, %v1497_v47  ;;  %v1533_v57 = vrot.slane %v1334_v48, 4  ;;  %v1164_v58 = vpop.f32.mrf.mxu1  ;;  %v1528_v62 = vmax.f32 %v1333_v42, %v1527_v52 }
 0x1d9   : > { %v1478_v59 = vmax.f32 %v1476_v40, %v1477_v50  ;;  %v1495_v60 = vrot.slane %v1494_v51, 1  ;;  %v1516_v63 = vmax.f32 %v1331_v43, %v1515_v53  ;;  %v1507_v0 = vrot.slane %v1506_v45, 1 }
 0x1da   : > { %v1512_v1 = vmax.f32 %v1510_v46, %v1511_v55  ;;  %v1499_v2 = vrot.slane %v1498_v56, 2  ;;  %v1534_v3 = vmax.f32 %v1334_v48, %v1533_v57  ;;  %v2225_v61 = vpop.f32.mrf.mxu1  ;;  %v1529_v6 = vrot.slane %v1528_v62, 2 }
 0x1db   : > { %v1840_v4 = vsel %vm1819_vm2, %v1478_v59, %v1472_v26  ;;  %v1496_v5 = vmax.f32 %v1494_v51, %v1495_v60  ;;  %v1517_v7 = vrot.slane %v1516_v63, 2  ;;  %v1152_v17 = vadd.f32 %v2540_v14, %v1151_v39 }
 0x1dc   : > { %v1841_v8 = vsel %vm1821_vm3, %v1484_v19, %v1840_v4  ;;  %v1513_v9 = vrot.slane %v1512_v1, 1  ;;  %v1500_v10 = vmax.f32 %v1498_v56, %v1499_v2  ;;  %v1535_v11 = vrot.slane %v1534_v3, 2  ;;  %v1167_v12 = vpop.f32.mrf.mxu1 }
 0x1dd   : > { %v1842_v13 = vsel %vm1823_vm4, %v1490_v54, %v1841_v8  ;;  %v1530_v15 = vmax.f32 %v1528_v62, %v1529_v6  ;;  %v1518_v16 = vmax.f32 %v1516_v63, %v1517_v7  ;;  %v1508_v18 = vmax.f32 %v1506_v45, %v1507_v0 }
 0x1de   : > { %v1843_v44 = vsel %vm1825_vm5, %v1496_v5, %v1842_v13  ;;  %v1501_v20 = vrot.slane %v1500_v10, 1  ;;  %v2606_v21 = vmax.f32 %v1534_v3, %v1535_v11  ;;  %v2228_v22 = vpop.f32.mrf.mxu1  ;;  %v1332_v19 = vmax.f32 %v1152_v17, 0.0 }
 0x1df   : > { %v1531_v23 = vrot.slane %v1530_v15, 1  ;;  %v1519_v24 = vrot.slane %v1518_v16, 1  ;;  %v1173_v25 = vadd.f32 %v2224_v49, %v2540_v14  ;;  %v1514_v26 = vmax.f32 %v1512_v1, %v1513_v9 }
 0x1e0   : > { %v1502_v27 = vmax.f32 %v1500_v10, %v1501_v20  ;;  %v1165_v28 = vadd.f32 %v2540_v14, %v1164_v58  ;;  %v1176_v29 = vadd.f32 %v2225_v61, %v2540_v14  ;;  %v1180_v30 = vpop.f32.mrf.mxu1  ;;  %v1537_v32 = vrot.slane %v2606_v21, 1 }
 0x1e1   : > { %v1532_v31 = vmax.f32 %v1530_v15, %v1531_v23  ;;  %v1521_v33 = vrot.slane %v1332_v19, 4  ;;  %v1337_v34 = vmax.f32 %v1173_v25, 0.0  ;;  %v1520_v36 = vmax.f32 %v1518_v16, %v1519_v24 }
 0x1e2   : > { %v1844_v35 = vsel %vm1827_vm6, %v1502_v27, %v1843_v44  ;;  %v1335_v37 = vmax.f32 %v1165_v28, 0.0  ;;  %v1338_v38 = vmax.f32 %v1176_v29, 0.0  ;;  %v2229_v39 = vpop.f32.mrf.mxu1  ;;  %v1168_v43 = vadd.f32 %v2540_v14, %v1167_v12 }
 0x1e3   : > { %v1845_v40 = vsel %vm1829_vm7, %v1508_v18, %v1844_v35  ;;  %v1522_v41 = vmax.f32 %v1332_v19, %v1521_v33  ;;  %v1551_v42 = vrot.slane %v1337_v34, 4  ;;  %v1189_v48 = vadd.f32 %v2228_v22, %v2540_v14 }
 0x1e4   : > { %v1846_v45 = vsel %vm1831_vm8, %v1514_v26, %v1845_v40  ;;  %v1539_v46 = vrot.slane %v1335_v37, 4  ;;  %v1557_v47 = vrot.slane %v1338_v38, 4  ;;  %v1183_v49 = vpop.f32.mrf.mxu1  ;;  %v1336_v52 = vmax.f32 %v1168_v43, 0.0 }
 0x1e5   : > { %1892 = vst [vmem:[%s2575_s27 + $0x10] sm:$0xff] %v1846_v45  ;;  %v1523_v50 = vrot.slane %v1522_v41, 2  ;;  %v1552_v51 = vmax.f32 %v1337_v34, %v1551_v42  ;;  %v1181_v53 = vadd.f32 %v2540_v14, %v1180_v30  ;;  %v1341_v56 = vmax.f32 %v1189_v48, 0.0 }
 0x1e6   : > { %v1540_v54 = vmax.f32 %v1335_v37, %v1539_v46  ;;  %v1558_v55 = vmax.f32 %v1338_v38, %v1557_v47  ;;  %v1192_v57 = vadd.f32 %v2229_v39, %v2540_v14  ;;  %v2232_v58 = vpop.f32.mrf.mxu1  ;;  %v1545_v62 = vrot.slane %v1336_v52, 4 }
 0x1e7   : > { %v1524_v59 = vmax.f32 %v1522_v41, %v1523_v50  ;;  %v1553_v60 = vrot.slane %v1552_v51, 2  ;;  %v1339_v63 = vmax.f32 %v1181_v53, 0.0  ;;  %v1575_v2 = vrot.slane %v1341_v56, 4 }
 0x1e8   : > { %v1541_v0 = vrot.slane %v1540_v54, 2  ;;  %v1559_v1 = vrot.slane %v1558_v55, 2  ;;  %v1342_v3 = vmax.f32 %v1192_v57, 0.0  ;;  %v1196_v61 = vpop.f32.mrf.mxu1  ;;  %v1546_v6 = vmax.f32 %v1336_v52, %v1545_v62 }
 0x1e9   : > { %v1525_v4 = vrot.slane %v1524_v59, 1  ;;  %v1554_v5 = vmax.f32 %v1552_v51, %v1553_v60  ;;  %v1563_v7 = vrot.slane %v1339_v63, 4  ;;  %v1576_v10 = vmax.f32 %v1341_v56, %v1575_v2 }
 0x1ea   : > { %v1542_v8 = vmax.f32 %v1540_v54, %v1541_v0  ;;  %v1560_v9 = vmax.f32 %v1558_v55, %v1559_v1  ;;  %v1581_v11 = vrot.slane %v1342_v3, 4  ;;  %v2233_v12 = vpop.f32.mrf.mxu1  ;;  %v1547_v16 = vrot.slane %v1546_v6, 2 }
 0x1eb   : > { %v1526_v13 = vmax.f32 %v1524_v59, %v1525_v4  ;;  %v1555_v15 = vrot.slane %v1554_v5, 1  ;;  %v1564_v17 = vmax.f32 %v1339_v63, %v1563_v7  ;;  %v1577_v20 = vrot.slane %v1576_v10, 2 }
 0x1ec   : > { %v1543_v18 = vrot.slane %v1542_v8, 1  ;;  %v1561_v44 = vrot.slane %v1560_v9, 1  ;;  %v1582_v22 = vmax.f32 %v1342_v3, %v1581_v11  ;;  %v1199_v23 = vpop.f32.mrf.mxu1  ;;  %v1538_v24 = vmax.f32 %v2606_v21, %v1537_v32 }
 0x1ed   : > { %v1847_v19 = vsel %vm1819_vm2, %v1526_v13, %v1520_v36  ;;  %v1548_v25 = vmax.f32 %v1546_v6, %v1547_v16  ;;  %v1565_v26 = vrot.slane %v1564_v17, 2  ;;  %v1556_v28 = vmax.f32 %v1554_v5, %v1555_v15 }
 0x1ee   : > { %v1848_v27 = vsel %vm1821_vm3, %v1532_v31, %v1847_v19  ;;  %v1544_v29 = vmax.f32 %v1542_v8, %v1543_v18  ;;  %v1578_v30 = vmax.f32 %v1576_v10, %v1577_v20  ;;  %v2236_v33 = vpop.f32.mrf.mxu1  ;;  %v1583_v38 = vrot.slane %v1582_v22, 2 }
 0x1ef   : > { %v1849_v34 = vsel %vm1823_vm4, %v1538_v24, %v1848_v27  ;;  %v1549_v35 = vrot.slane %v1548_v25, 1  ;;  %v1566_v37 = vmax.f32 %v1564_v17, %v1565_v26  ;;  %v1562_v39 = vmax.f32 %v1560_v9, %v1561_v44 }
 0x1f0   : > { %v1579_v40 = vrot.slane %v1578_v30, 1  ;;  %v1184_v41 = vadd.f32 %v2540_v14, %v1183_v49  ;;  %v1205_v21 = vadd.f32 %v2232_v58, %v2540_v14  ;;  %v1212_v32 = vpop.f32.mrf.mxu1  ;;  %v1584_v43 = vmax.f32 %v1582_v22, %v1583_v38 }
 0x1f1   : > { %v1550_v36 = vmax.f32 %v1548_v25, %v1549_v35  ;;  %v1567_v42 = vrot.slane %v1566_v37, 1  ;;  %v1197_v31 = vadd.f32 %v2540_v14, %v1196_v61  ;;  %v1850_v45 = vsel %vm1825_vm5, %v1544_v29, %v1849_v34 }
 0x1f2   : > { %v1340_v46 = vmax.f32 %v1184_v41, 0.0  ;;  %v1345_v47 = vmax.f32 %v1205_v21, 0.0  ;;  %v1208_v48 = vadd.f32 %v2233_v12, %v2540_v14  ;;  %v2237_v50 = vpop.f32.mrf.mxu1  ;;  %v2630_v52 = vmax.f32 %v1578_v30, %v1579_v40 }
 0x1f3   : > { %v1851_v51 = vsel %vm1827_vm6, %v1550_v36, %v1850_v45  ;;  %v1568_v49 = vmax.f32 %v1566_v37, %v1567_v42  ;;  %v1343_v53 = vmax.f32 %v1197_v31, 0.0  ;;  %v1585_v60 = vrot.slane %v1584_v43, 1 }
 0x1f4   : > { %v1852_v54 = vsel %vm1829_vm7, %v1556_v28, %v1851_v51  ;;  %v1569_v55 = vrot.slane %v1340_v46, 4  ;;  %v1599_v56 = vrot.slane %v1345_v47, 4  ;;  %v1346_v57 = vmax.f32 %v1208_v48, 0.0  ;;  %v1215_v58 = vpop.f32.mrf.mxu1 }
 0x1f5   : > { %v1853_v59 = vsel %vm1831_vm8, %v1562_v39, %v1852_v54  ;;  %v1587_v62 = vrot.slane %v1343_v53, 4  ;;  %v1200_v63 = vadd.f32 %v2540_v14, %v1199_v23  ;;  %v1221_v3 = vadd.f32 %v2236_v33, %v2540_v14 }
 0x1f6   : > { %1893 = vst [vmem:[%s2575_s27 + $0x18] sm:$0xff] %v1853_v59  ;;  %v1570_v0 = vmax.f32 %v1340_v46, %v1569_v55  ;;  %v1600_v1 = vmax.f32 %v1345_v47, %v1599_v56  ;;  %v1605_v2 = vrot.slane %v1346_v57, 4  ;;  %v2240_v61 = vpop.f32.mrf.mxu1  ;;  %v1213_v6 = vadd.f32 %v2540_v14, %v1212_v32 }
 0x1f7   : > { %v1588_v4 = vmax.f32 %v1343_v53, %v1587_v62  ;;  %v1344_v5 = vmax.f32 %v1200_v63, 0.0  ;;  %v1224_v7 = vadd.f32 %v2237_v50, %v2540_v14  ;;  %v1349_v11 = vmax.f32 %v1221_v3, 0.0 }
 0x1f8   : > { %v1571_v8 = vrot.slane %v1570_v0, 2  ;;  %v1601_v9 = vrot.slane %v1600_v1, 2  ;;  %v1606_v10 = vmax.f32 %v1346_v57, %v1605_v2  ;;  %v1228_v12 = vpop.f32.mrf.mxu1  ;;  %v1347_v16 = vmax.f32 %v1213_v6, 0.0 }
 0x1f9   : > { %v1589_v13 = vrot.slane %v1588_v4, 2  ;;  %v1593_v15 = vrot.slane %v1344_v5, 4  ;;  %v1350_v17 = vmax.f32 %v1224_v7, 0.0  ;;  %v1623_v22 = vrot.slane %v1349_v11, 4 }
 0x1fa   : > { %v1572_v18 = vmax.f32 %v1570_v0, %v1571_v8  ;;  %v1602_v44 = vmax.f32 %v1600_v1, %v1601_v9  ;;  %v1607_v20 = vrot.slane %v1606_v10, 2  ;;  %v2241_v23 = vpop.f32.mrf.mxu1  ;;  %v1611_v25 = vrot.slane %v1347_v16, 4 }
 0x1fb   : > { %v1590_v24 = vmax.f32 %v1588_v4, %v1589_v13  ;;  %v1594_v19 = vmax.f32 %v1344_v5, %v1593_v15  ;;  %v1629_v26 = vrot.slane %v1350_v17, 4  ;;  %v1624_v30 = vmax.f32 %v1349_v11, %v1623_v22 }
 0x1fc   : > { %v1573_v27 = vrot.slane %v1572_v18, 1  ;;  %v1603_v28 = vrot.slane %v1602_v44, 1  ;;  %v1608_v29 = vmax.f32 %v1606_v10, %v1607_v20  ;;  %v1231_v33 = vpop.f32.mrf.mxu1  ;;  %v1612_v37 = vmax.f32 %v1347_v16, %v1611_v25 }
 0x1fd   : > { %v1591_v34 = vrot.slane %v1590_v24, 1  ;;  %v1595_v35 = vrot.slane %v1594_v19, 2  ;;  %v1630_v38 = vmax.f32 %v1350_v17, %v1629_v26  ;;  %v1586_v39 = vmax.f32 %v1584_v43, %v1585_v60 }
 0x1fe   : > { %v1574_v40 = vmax.f32 %v1572_v18, %v1573_v27  ;;  %v1609_v41 = vrot.slane %v1608_v29, 1  ;;  %v1625_v21 = vrot.slane %v1624_v30, 2  ;;  %v2244_v32 = vpop.f32.mrf.mxu1  ;;  %v1613_v31 = vrot.slane %v1612_v37, 2 }
 0x1ff   : > { %v1592_v36 = vmax.f32 %v1590_v24, %v1591_v34  ;;  %v1596_v42 = vmax.f32 %v1594_v19, %v1595_v35  ;;  %v1631_v45 = vrot.slane %v1630_v38, 2  ;;  %v1604_v47 = vmax.f32 %v1602_v44, %v1603_v28 }
 0x200   : > { %v1854_v46 = vsel %vm1819_vm2, %v1574_v40, %v1568_v49  ;;  %v1626_v48 = vmax.f32 %v1624_v30, %v1625_v21  ;;  %v1216_v50 = vadd.f32 %v2540_v14, %v1215_v58  ;;  %v1244_v51 = vpop.f32.mrf.mxu1  ;;  %v1614_v43 = vmax.f32 %v1612_v37, %v1613_v31 }
 0x201   : > { %v1855_v53 = vsel %vm1821_vm3, %v2630_v52, %v1854_v46  ;;  %v1597_v54 = vrot.slane %v1596_v42, 1  ;;  %v1632_v55 = vmax.f32 %v1630_v38, %v1631_v45  ;;  %v1237_v60 = vadd.f32 %v2240_v61, %v2540_v14 }
 0x202   : > { %v1856_v56 = vsel %vm1823_vm4, %v1586_v39, %v1855_v53  ;;  %v1627_v57 = vrot.slane %v1626_v48, 1  ;;  %v1348_v59 = vmax.f32 %v1216_v50, 0.0  ;;  %v2245_v62 = vpop.f32.mrf.mxu1  ;;  %v1610_v63 = vmax.f32 %v1608_v29, %v1609_v41 }
 0x203   : > { %v1857_v49 = vsel %vm1825_vm5, %v1592_v36, %v1856_v56  ;;  %v1598_v0 = vmax.f32 %v1596_v42, %v1597_v54  ;;  %v1615_v1 = vrot.slane %v1614_v43, 1  ;;  %v1633_v58 = vrot.slane %v1632_v55, 1 }
 0x204   : > { %v1617_v2 = vrot.slane %v1348_v59, 4  ;;  %v1353_v3 = vmax.f32 %v1237_v60, 0.0  ;;  %v1229_v52 = vadd.f32 %v2540_v14, %v1228_v12  ;;  %v2647_v4 = vpop.f32.mrf.mxu1  ;;  %v1628_v6 = vmax.f32 %v1626_v48, %v1627_v57 }
 0x205   : > { %v1858_v5 = vsel %vm1827_vm6, %v1598_v0, %v1857_v49  ;;  %v1616_v7 = vmax.f32 %v1614_v43, %v1615_v1  ;;  %v1240_v61 = vadd.f32 %v2241_v23, %v2540_v14  ;;  %v1232_v17 = vadd.f32 %v2540_v14, %v1231_v33 }
 0x206   : > { %v1859_v8 = vsel %vm1829_vm7, %v1604_v47, %v1858_v5  ;;  %v1618_v9 = vmax.f32 %v1348_v59, %v1617_v2  ;;  %v1647_v10 = vrot.slane %v1353_v3, 4  ;;  %v1351_v11 = vmax.f32 %v1229_v52, 0.0  ;;  %v2248_v13 = vpop.f32.mrf.mxu1 }
 0x207   : > { %v1860_v15 = vsel %vm1831_vm8, %v1610_v63, %v1859_v8  ;;  %v1354_v16 = vmax.f32 %v1240_v61, 0.0  ;;  %v1253_v12 = vadd.f32 %v2244_v32, %v2540_v14  ;;  %v1245_v22 = vadd.f32 %v2540_v14, %v1244_v51 }
 0x208   : > { %1894 = vst [vmem:[%s2575_s27 + $0x20] sm:$0xff] %v1860_v15  ;;  %v1619_v18 = vrot.slane %v1618_v9, 2  ;;  %v1648_v44 = vmax.f32 %v1353_v3, %v1647_v10  ;;  %v1635_v20 = vrot.slane %v1351_v11, 4  ;;  %v1260_v23 = vpop.f32.mrf.mxu1  ;;  %v1352_v19 = vmax.f32 %v1232_v17, 0.0 }
 0x209   : > { %v1653_v24 = vrot.slane %v1354_v16, 4  ;;  %v1357_v25 = vmax.f32 %v1253_v12, 0.0  ;;  %v1256_v26 = vadd.f32 %v2245_v62, %v2540_v14  ;;  %v1355_v30 = vmax.f32 %v1245_v22, 0.0 }
 0x20a   : > { %v1620_v27 = vmax.f32 %v1618_v9, %v1619_v18  ;;  %v1649_v28 = vrot.slane %v1648_v44, 2  ;;  %v1636_v29 = vmax.f32 %v1351_v11, %v1635_v20  ;;  %v2249_v34 = vpop.f32.mrf.mxu1  ;;  %v1641_v35 = vrot.slane %v1352_v19, 4 }
 0x20b   : > { %v1654_v33 = vmax.f32 %v1354_v16, %v1653_v24  ;;  %v1671_v37 = vrot.slane %v1357_v25, 4  ;;  %v1358_v38 = vmax.f32 %v1256_v26, 0.0  ;;  %v1659_v21 = vrot.slane %v1355_v30, 4 }
 0x20c   : > { %v1621_v39 = vrot.slane %v1620_v27, 1  ;;  %v1650_v40 = vmax.f32 %v1648_v44, %v1649_v28  ;;  %v1637_v41 = vrot.slane %v1636_v29, 2  ;;  %v1263_v32 = vpop.f32.mrf.mxu1  ;;  %v1642_v42 = vmax.f32 %v1352_v19, %v1641_v35 }
 0x20d   : > { %v1655_v36 = vrot.slane %v1654_v33, 2  ;;  %v1672_v31 = vmax.f32 %v1357_v25, %v1671_v37  ;;  %v1677_v45 = vrot.slane %v1358_v38, 4  ;;  %v1634_v46 = vmax.f32 %v1632_v55, %v1633_v58 }
 0x20e   : > { %v1622_v47 = vmax.f32 %v1620_v27, %v1621_v39  ;;  %v1638_v48 = vmax.f32 %v1636_v29, %v1637_v41  ;;  %v1660_v50 = vmax.f32 %v1355_v30, %v1659_v21  ;;  %v2252_v51 = vpop.f32.mrf.mxu1  ;;  %v1651_v53 = vrot.slane %v1650_v40, 1 }
 0x20f   : > { %v1656_v54 = vmax.f32 %v1654_v33, %v1655_v36  ;;  %v1643_v43 = vrot.slane %v1642_v42, 2  ;;  %v1673_v56 = vrot.slane %v1672_v31, 2  ;;  %v1678_v62 = vmax.f32 %v1358_v38, %v1677_v45 }
 0x210   : > { %v1861_v57 = vsel %vm1819_vm2, %v1622_v47, %v1616_v7  ;;  %v1639_v59 = vrot.slane %v1638_v48, 1  ;;  %v1661_v60 = vrot.slane %v1660_v50, 2  ;;  %v1276_v49 = vpop.f32.mrf.mxu1  ;;  %v1248_v5 = vadd.f32 %v2540_v14, %v2647_v4 }
 0x211   : > { %v1862_v63 = vsel %vm1821_vm3, %v1628_v6, %v1861_v57  ;;  %v1657_v0 = vrot.slane %v1656_v54, 1  ;;  %v1644_v1 = vmax.f32 %v1642_v42, %v1643_v43  ;;  %v2660_v2 = vmax.f32 %v1672_v31, %v1673_v56  ;;  %v2668_v6 = vld [vmem:[%s2712_s4] ss:$0 sm:$0xff] }
 0x212   : > { %v1640_v55 = vmax.f32 %v1638_v48, %v1639_v59  ;;  %v1662_v58 = vmax.f32 %v1660_v50, %v1661_v60  ;;  %v1863_v3 = vsel %vm1823_vm4, %v1634_v46, %v1862_v63  ;;  %v2253_v61 = vpop.f32.mrf.mxu1  ;;  %v1652_v7 = vmax.f32 %v1650_v40, %v1651_v53 }
 0x213   : > { %v1645_v52 = vrot.slane %v1644_v1, 1  ;;  %v1658_v8 = vmax.f32 %v1656_v54, %v1657_v0  ;;  %v1679_v9 = vrot.slane %v1678_v62, 2  ;;  %v1269_v10 = vadd.f32 %v2668_v6, %v2248_v13 }
 0x214   : > { %v1675_v15 = vrot.slane %v2660_v2, 1  ;;  %v1356_v16 = vmax.f32 %v1248_v5, 0.0  ;;  %v1261_v17 = vadd.f32 %v2668_v6, %v1260_v23  ;;  %v1864_v12 = vsel %vm1825_vm5, %v1640_v55, %v1863_v3  ;;  %v1279_v13 = vpop.f32.mrf.mxu1 }
 0x215   : > { %v1646_v11 = vmax.f32 %v1644_v1, %v1645_v52  ;;  %v1663_v14 = vrot.slane %v1662_v58, 1  ;;  %v1361_v4 = vmax.f32 %v1269_v10, 0.0  ;;  %v1272_v18 = vadd.f32 %v2668_v6, %v2249_v34 }
 0x216   : > { %v1665_v20 = vrot.slane %v1356_v16, 4  ;;  %v1359_v22 = vmax.f32 %v1261_v17, 0.0  ;;  %v1264_v24 = vadd.f32 %v2668_v6, %v1263_v32  ;;  %v1680_v25 = vmax.f32 %v1678_v62, %v1679_v9  ;;  %v2256_v21 = vpop.f32.mrf.mxu1 }
 0x217   : > { %v1865_v44 = vsel %vm1827_vm6, %v1646_v11, %v1864_v12  ;;  %v1695_v26 = vrot.slane %v1361_v4, 4  ;;  %v1362_v27 = vmax.f32 %v1272_v18, 0.0  ;;  %v1285_v35 = vadd.f32 %v2668_v6, %v2252_v51 }
 0x218   : > { %v1866_v19 = vsel %vm1829_vm7, %v1652_v7, %v1865_v44  ;;  %v1666_v28 = vmax.f32 %v1356_v16, %v1665_v20  ;;  %v1683_v29 = vrot.slane %v1359_v22, 4  ;;  %v1360_v30 = vmax.f32 %v1264_v24, 0.0  ;;  %v1292_v59 = vpop.f32.mrf.mxu1 }
 0x219   : > { %v1867_v23 = vsel %vm1831_vm8, %v1658_v8, %v1866_v19  ;;  %v1696_v33 = vmax.f32 %v1361_v4, %v1695_v26  ;;  %v1701_v34 = vrot.slane %v1362_v27, 4  ;;  %v1277_v37 = vadd.f32 %v2668_v6, %v1276_v49 }
 0x21a   : > { %1895 = vst [vmem:[%s2575_s27 + $0x28] sm:$0xff] %v1867_v23  ;;  %v1667_v38 = vrot.slane %v1666_v28, 2  ;;  %v1684_v39 = vmax.f32 %v1359_v22, %v1683_v29  ;;  %v1689_v40 = vrot.slane %v1360_v30, 4  ;;  %v1288_v41 = vadd.f32 %v2668_v6, %v2253_v61  ;;  %v2257_v11 = vpop.f32.mrf.mxu1 }
 0x21b   : > { %v1697_v32 = vrot.slane %v1696_v33, 2  ;;  %v1702_v36 = vmax.f32 %v1362_v27, %v1701_v34  ;;  %v1365_v42 = vmax.f32 %v1285_v35, 0.0  ;;  %v1363_v31 = vmax.f32 %v1277_v37, 0.0 }
 0x21c   : > { %v1668_v45 = vmax.f32 %v1666_v28, %v1667_v38  ;;  %v1685_v46 = vrot.slane %v1684_v39, 2  ;;  %v1690_v47 = vmax.f32 %v1360_v30, %v1689_v40  ;;  %v1366_v48 = vmax.f32 %v1288_v41, 0.0 }
 0x21d   : > { %v1681_v50 = vrot.slane %v1680_v25, 1  ;;  %v1698_v53 = vmax.f32 %v1696_v33, %v1697_v32  ;;  %v1703_v54 = vrot.slane %v1702_v36, 2  ;;  %v1707_v51 = vrot.slane %v1363_v31, 4 }
 0x21e   : > { %v1669_v43 = vrot.slane %v1668_v45, 1  ;;  %v1686_v56 = vmax.f32 %v1684_v39, %v1685_v46  ;;  %v1691_v57 = vrot.slane %v1690_v47, 2  ;;  %v1664_v60 = vmax.f32 %v1662_v58, %v1663_v14 }
 0x21f   : > { %v1704_v62 = vmax.f32 %v1702_v36, %v1703_v54  ;;  %v1719_v49 = vrot.slane %v1365_v42, 4  ;;  %v1725_v55 = vrot.slane %v1366_v48, 4  ;;  %v1676_v3 = vmax.f32 %v2660_v2, %v1675_v15 }
 0x220   : > { %v1670_v63 = vmax.f32 %v1668_v45, %v1669_v43  ;;  %v1687_v0 = vrot.slane %v1686_v56, 1  ;;  %v1692_v1 = vmax.f32 %v1690_v47, %v1691_v57  ;;  %v1682_v52 = vmax.f32 %v1680_v25, %v1681_v50  ;;  %v1295_v25 = vpop.f32.mrf.mxu1 }
 0x221   : > { %v1699_v5 = vrot.slane %v1698_v53, 1  ;;  %v1708_v61 = vmax.f32 %v1363_v31, %v1707_v51  ;;  %v1705_v9 = vrot.slane %v1704_v62, 1  ;;  %v1720_v58 = vmax.f32 %v1365_v42, %v1719_v49 }
 0x222   : > { %v1868_v7 = vsel %vm1819_vm2, %v1670_v63, %v1664_v60  ;;  %v1688_v8 = vmax.f32 %v1686_v56, %v1687_v0  ;;  %v1693_v10 = vrot.slane %v1692_v1, 1  ;;  %v1726_v14 = vmax.f32 %v1366_v48, %v1725_v55 }
 0x223   : > { %v1869_v16 = vsel %vm1821_vm3, %v1676_v3, %v1868_v7  ;;  %v1280_v4 = vadd.f32 %v2668_v6, %v1279_v13  ;;  %v1700_v18 = vmax.f32 %v1698_v53, %v1699_v5  ;;  %v1709_v15 = vrot.slane %v1708_v61, 2 }
 0x224   : > { %v1870_v17 = vsel %vm1823_vm4, %v1682_v52, %v1869_v16  ;;  %v1694_v12 = vmax.f32 %v1692_v1, %v1693_v10  ;;  %v1301_v44 = vadd.f32 %v2668_v6, %v2256_v21  ;;  %v1706_v20 = vmax.f32 %v1704_v62, %v1705_v9 }
 0x225   : > { %v1871_v2 = vsel %vm1825_vm5, %v1688_v8, %v1870_v17  ;;  %v1364_v24 = vmax.f32 %v1280_v4, 0.0  ;;  %v1293_v19 = vadd.f32 %v2668_v6, %v1292_v59  ;;  %v1721_v27 = vrot.slane %v1720_v58, 2 }
 0x226   : > { %v1872_v22 = vsel %vm1827_vm6, %v1694_v12, %v1871_v2  ;;  %v1369_v23 = vmax.f32 %v1301_v44, 0.0  ;;  %v1727_v28 = vrot.slane %v1726_v14, 2  ;;  %v1304_v34 = vadd.f32 %v2668_v6, %v2257_v11 }
 0x227   : > { %v1873_v26 = vsel %vm1829_vm7, %v1700_v18, %v1872_v22  ;;  %v1713_v29 = vrot.slane %v1364_v24, 4  ;;  %v1367_v30 = vmax.f32 %v1293_v19, 0.0  ;;  %v1296_v35 = vadd.f32 %v2668_v6, %v1295_v25 }
 0x228   : > { %v1874_v13 = vsel %vm1831_vm8, %v1706_v20, %v1873_v26  ;;  %v1743_v33 = vrot.slane %v1369_v23, 4  ;;  %v1710_v37 = vmax.f32 %v1708_v61, %v1709_v15  ;;  %v1722_v40 = vmax.f32 %v1720_v58, %v1721_v27 }
 0x229   : > { %1896 = vst [vmem:[%s2575_s27 + $0x30] sm:$0xff] %v1874_v13  ;;  %v1714_v38 = vmax.f32 %v1364_v24, %v1713_v29  ;;  %v1731_v39 = vrot.slane %v1367_v30, 4  ;;  %v1370_v21 = vmax.f32 %v1304_v34, 0.0  ;;  %v1368_v32 = vmax.f32 %v1296_v35, 0.0 }
 0x22a   : > { %v1744_v41 = vmax.f32 %v1369_v23, %v1743_v33  ;;  %v1728_v36 = vmax.f32 %v1726_v14, %v1727_v28  ;;  %v1711_v48 = vrot.slane %v1710_v37, 1  ;;  %v1723_v54 = vrot.slane %v1722_v40, 1 }
 0x22b   : > { %v1715_v42 = vrot.slane %v1714_v38, 2  ;;  %v1732_v31 = vmax.f32 %v1367_v30, %v1731_v39  ;;  %v1749_v46 = vrot.slane %v1370_v21, 4  ;;  %v1737_v47 = vrot.slane %v1368_v32, 4 }
 0x22c   : > { %v1745_v45 = vrot.slane %v1744_v41, 2  ;;  %v1729_v6 = vrot.slane %v1728_v36, 1  ;;  %v1712_v49 = vmax.f32 %v1710_v37, %v1711_v48  ;;  %v1724_v1 = vmax.f32 %v1722_v40, %v1723_v54 }
 0x22d   : > { %v1716_v50 = vmax.f32 %v1714_v38, %v1715_v42  ;;  %v1733_v53 = vrot.slane %v1732_v31, 2  ;;  %v1750_v51 = vmax.f32 %v1370_v21, %v1749_v46  ;;  %v1738_v43 = vmax.f32 %v1368_v32, %v1737_v47 }
 0x22e   : > { %v1746_v57 = vmax.f32 %v1744_v41, %v1745_v45  ;;  %v1730_v52 = vmax.f32 %v1728_v36, %v1729_v6 }
 0x22f   : > { %v1717_v56 = vrot.slane %v1716_v50, 1  ;;  %v1734_v59 = vmax.f32 %v1732_v31, %v1733_v53  ;;  %v1751_v60 = vrot.slane %v1750_v51, 2  ;;  %v1739_v62 = vrot.slane %v1738_v43, 2 }
 0x230   : > { %v1747_v61 = vrot.slane %v1746_v57, 1 }
 0x231   : > { %v1718_v63 = vmax.f32 %v1716_v50, %v1717_v56  ;;  %v1735_v0 = vrot.slane %v1734_v59, 1  ;;  %v1752_v55 = vmax.f32 %v1750_v51, %v1751_v60  ;;  %v1740_v3 = vmax.f32 %v1738_v43, %v1739_v62 }
 0x232   : > { %v1748_v58 = vmax.f32 %v1746_v57, %v1747_v61 }
 0x233   : > { %v1875_v5 = vsel %vm1819_vm2, %v1718_v63, %v1712_v49  ;;  %v1736_v7 = vmax.f32 %v1734_v59, %v1735_v0  ;;  %v1753_v9 = vrot.slane %v1752_v55, 1  ;;  %v1741_v10 = vrot.slane %v1740_v3, 1 }
 0x234   : > { %v1876_v8 = vsel %vm1821_vm3, %v1724_v1, %v1875_v5 }
 0x235   : > { %v1877_v11 = vsel %vm1823_vm4, %v1730_v52, %v1876_v8  ;;  %v1742_v16 = vmax.f32 %v1740_v3, %v1741_v10  ;;  %v1754_v12 = vmax.f32 %v1752_v55, %v1753_v9 }
 0x236   : > { %v1878_v17 = vsel %vm1825_vm5, %v1736_v7, %v1877_v11 }
 0x237   : > { %v1879_v14 = vsel %vm1827_vm6, %v1742_v16, %v1878_v17 }
 0x238   : > { %v1880_v4 = vsel %vm1829_vm7, %v1748_v58, %v1879_v14 }
 0x239   : > { %v1881_v18 = vsel %vm1831_vm8, %v1754_v12, %v1880_v4 }
 0x23a   : > { %1897 = vst [vmem:[%s2575_s27 + $0x38] sm:$0xff] %v1881_v18 }
 0x23b PF: > { %s15_s18 = sadd.s32 1, %s2330_s18  }
 0x23c   : > { %p12_p5 = scmp.ge.s32.totalorder %s15_s18, 4  }
 0x23e   :  { %14 = sbr.rel (!%p12_p5) target bundleno = 1 (0x1), region = 70 }

</bundles_post_ra>
